<compile_context>
chip_gen: v5e
topology: v5e:2x2
jax: 0.10.0
libtpu: 0.0.40
codegen_flags: <defaults>
</compile_context>

<pallas_src>
import functools
import math

import jax
import jax.numpy as jnp
import numpy as np
from jax.experimental import pallas as pl
from jax.experimental.pallas import tpu as pltpu

LN_EPS = 1e-5                 # torch.nn.LayerNorm default
_Q, _K, _V = 0, 1, 2          # chunk order of the fused QKV slab (kernel A <-> wrapper)


# --------------------------------------------------------------------------
# Chip-dependent tiling / VMEM budget helpers
# --------------------------------------------------------------------------
@functools.lru_cache(maxsize=None)
def _tpu_vmem_bytes():
    try:
        return int(pltpu.get_tpu_info().vmem_capacity_bytes)
    except Exception:
        return 64 * 1024 * 1024          # conservative fallback (v7x-sized)


def _vmem_limit():
    # Leave headroom below physical VMEM; 96 MiB on 128-MiB chips (v5e/v6e),
    # ~48 MiB on 64-MiB chips (v7x).
    return int(min(_tpu_vmem_bytes() * 3 // 4, 96 * 1024 * 1024))


def _seq_tile(seq_len):
    pref = 512 if _tpu_vmem_bytes() >= 100 * 1024 * 1024 else 256
    for cand in (pref, 256, 128):
        if seq_len % cand == 0:
            return cand
    return seq_len


def _kv_tile(seq_len):
    for cand in (512, 256, 128):
        if seq_len % cand == 0:
            return cand
    return seq_len


def _weight_spec(shape, elem_bytes=2):
    """Resident weight: constant index map (fetched once per pallas_call).

    Large weights request a single VMEM buffer (no point double-buffering a
    block whose index never changes); small ones use the default to keep the
    tiny-shape test path on the most conservative API surface.
    """
    zeros = (0,) * len(shape)
    index_map = lambda *_args, _z=zeros: _z
    nbytes = int(np.prod(shape)) * elem_bytes
    if nbytes >= (1 << 20) and hasattr(pl, "Buffered"):
        try:
            return pl.BlockSpec(shape, index_map, pipeline_mode=pl.Buffered(1))
        except TypeError:
            pass
    return pl.BlockSpec(shape, index_map)


def _layer_norm(x, w, b):
    x = x.astype(jnp.float32)
    mean = jnp.mean(x, axis=-1, keepdims=True)
    var = jnp.mean(jnp.square(x - mean), axis=-1, keepdims=True)
    return (x - mean) * jax.lax.rsqrt(var + LN_EPS) * w + b


# --------------------------------------------------------------------------
# Kernel A: pre-LN + fused QKV projection (lane-dense (ts, H) stores per chunk)
# --------------------------------------------------------------------------
def _ln_qkv_kernel(x_ref, lnw_ref, lnb_ref, wqkv_ref, bqkv_ref, qkv_ref):
    h = _layer_norm(x_ref[0], lnw_ref[...], lnb_ref[...]).astype(jnp.bfloat16)
    # Three chunked (ts,H)@(H,H) matmuls (q / k / v): each result is stored
    # immediately, bounding the live MXU result to one (ts, H) slab and
    # producing only full-width lane-dense stores.
    for c in (_Q, _K, _V):
        r = jnp.dot(h, wqkv_ref[c], preferred_element_type=jnp.float32) + bqkv_ref[c]
        qkv_ref[0, c] = r.astype(jnp.bfloat16)


def run_ln_qkv(x, kp):
    B, S, H = x.shape
    ts = _seq_tile(S)
    flops = 2 * B * S * H * 3 * H
    bytes_acc = 4 * B * S * H + 2 * 3 * B * S * H + 2 * 3 * H * H + 4 * 5 * H
    return pl.pallas_call(
        _ln_qkv_kernel,
        out_shape=jax.ShapeDtypeStruct((B, 3, S, H), jnp.bfloat16),
        grid=(B, S // ts),
        in_specs=[
            pl.BlockSpec((1, ts, H), lambda b, s: (b, s, 0)),     # x tile (f32)
            _weight_spec((1, H), 4), _weight_spec((1, H), 4),     # attn LN gamma/beta
            _weight_spec((3, H, H), 2),                           # QKV weights (bf16)
            _weight_spec((3, 1, H), 4),                           # QKV bias (f32)
        ],
        out_specs=pl.BlockSpec((1, 3, ts, H), lambda b, s: (b, 0, s, 0)),
        compiler_params=pltpu.CompilerParams(
            dimension_semantics=("parallel", "parallel"),
            vmem_limit_bytes=_vmem_limit()),
        cost_estimate=pl.CostEstimate(flops=flops, transcendentals=B * S,
                                      bytes_accessed=bytes_acc),
    )(x, kp["ln1_w"], kp["ln1_b"], kp["wqkv"], kp["bqkv"])


# --------------------------------------------------------------------------
# Kernel B: flash attention (online softmax over KV tiles) + out-proj + residual
# Q is pre-scaled by 1/sqrt(head_dim) (folded into the projection weights).
# --------------------------------------------------------------------------
def _flash_attn_kernel(x_ref, q_ref, k_ref, v_ref, mask_ref, wout_ref, bout_ref,
                       y_ref, m_sc, l_sc, acc_sc, *, nhead):
    ki = pl.program_id(2)

    @pl.when(ki == 0)
    def _init():
        m_sc[...] = jnp.full(m_sc.shape, -jnp.inf, jnp.float32)
        l_sc[...] = jnp.zeros(l_sc.shape, jnp.float32)
        acc_sc[...] = jnp.zeros(acc_sc.shape, jnp.float32)

    q = q_ref[0]                                   # (nhead, ts, hd) bf16
    k = k_ref[0]                                   # (nhead, tk, hd) bf16
    v = v_ref[0]
    s = jnp.einsum("hqd,hkd->hqk", q, k, preferred_element_type=jnp.float32)
    s = s + mask_ref[0]                            # additive -1e9 on padded keys

    m_prev = m_sc[...]
    m_new = jnp.maximum(m_prev, jnp.max(s, axis=-1, keepdims=True))
    alpha = jnp.exp(m_prev - m_new)                # (nhead, ts, 1) f32
    # exp in bf16 halves EUP pressure on v6e/v7x; m/l stay f32 and P is needed
    # in bf16 for the MXU anyway.
    p = jnp.exp((s - m_new).astype(jnp.bfloat16))  # (nhead, ts, tk) bf16
    l_sc[...] = alpha * l_sc[...] + jnp.sum(p.astype(jnp.float32),
                                            axis=-1, keepdims=True)
    acc_sc[...] = alpha * acc_sc[...] + jnp.einsum(
        "hqk,hkd->hqd", p, v, preferred_element_type=jnp.float32)
    m_sc[...] = m_new

    @pl.when(ki == pl.num_programs(2) - 1)
    def _finalize():
        # Normalize AFTER P@V (O(nhead*ts*hd)), then fused out-projection:
        # y = x + bout + sum_h ctx_h @ Wout_h  -> single lane-dense (ts, H) store.
        inv_l = pl.reciprocal(l_sc[...], approx=True)      # (nhead, ts, 1)
        out = x_ref[0] + bout_ref[...]
        for h in range(nhead):
            ctx_h = (acc_sc[h] * inv_l[h]).astype(jnp.bfloat16)
            out = out + jnp.dot(ctx_h, wout_ref[h],
                                preferred_element_type=jnp.float32)
        y_ref[0] = out


def run_attention_outproj(x, q_h, k_h, v_h, mask_add, kp):
    B, nhead, S, hd = q_h.shape
    H = nhead * hd
    ts = _seq_tile(S)
    tk = _kv_tile(S)
    kernel = functools.partial(_flash_attn_kernel, nhead=nhead)
    flops = 4 * B * S * S * H + 2 * B * S * H * H
    bytes_acc = 8 * B * S * H + 2 * B * S * H + 2 * (S // ts) * 2 * B * S * H
    return pl.pallas_call(
        kernel,
        out_shape=jax.ShapeDtypeStruct((B, S, H), jnp.float32),
        grid=(B, S // ts, S // tk),
        in_specs=[
            pl.BlockSpec((1, ts, H), lambda b, q, k: (b, q, 0)),            # residual x
            pl.BlockSpec((1, nhead, ts, hd), lambda b, q, k: (b, 0, q, 0)),  # Q tile
            pl.BlockSpec((1, nhead, tk, hd), lambda b, q, k: (b, 0, k, 0)),  # K tile
            pl.BlockSpec((1, nhead, tk, hd), lambda b, q, k: (b, 0, k, 0)),  # V tile
            pl.BlockSpec((1, 1, tk), lambda b, q, k: (b, 0, k)),             # key mask
            _weight_spec((nhead, hd, H), 2),                                 # Wout (per head)
            _weight_spec((1, H), 4),                                         # out-proj bias
        ],
        out_specs=pl.BlockSpec((1, ts, H), lambda b, q, k: (b, q, 0)),
        scratch_shapes=[
            pltpu.VMEM((nhead, ts, 1), jnp.float32),   # running max
            pltpu.VMEM((nhead, ts, 1), jnp.float32),   # running sum
            pltpu.VMEM((nhead, ts, hd), jnp.float32),  # un-normalized context
        ],
        compiler_params=pltpu.CompilerParams(
            dimension_semantics=("parallel", "parallel", "arbitrary"),
            vmem_limit_bytes=_vmem_limit()),
        cost_estimate=pl.CostEstimate(flops=flops,
                                      transcendentals=B * nhead * S * S,
                                      bytes_accessed=bytes_acc),
    )(x, q_h, k_h, v_h, mask_add, kp["wout_r"], kp["bout"])


# --------------------------------------------------------------------------
# Kernel C: pre-LN FFN (relu) + residual (+ fused final encoder LayerNorm)
# --------------------------------------------------------------------------
def _ffn_kernel(x_ref, ln2w_ref, ln2b_ref, w1_ref, b1_ref, w2_ref, b2_ref,
                *rest, fuse_final_ln):
    if fuse_final_ln:
        finw_ref, finb_ref, y_ref = rest
    else:
        (y_ref,) = rest
    x = x_ref[0]                                                        # (ts, H) f32
    h2 = _layer_norm(x, ln2w_ref[...], ln2b_ref[...]).astype(jnp.bfloat16)
    a = jnp.dot(h2, w1_ref[...], preferred_element_type=jnp.float32) + b1_ref[...]
    a = jnp.maximum(a, 0.0).astype(jnp.bfloat16)                        # relu
    y = x + jnp.dot(a, w2_ref[...], preferred_element_type=jnp.float32) + b2_ref[...]
    if fuse_final_ln:
        y = _layer_norm(y, finw_ref[...], finb_ref[...])
    y_ref[0] = y


def run_ffn(x, kp, fin_w, fin_b, *, fuse_final_ln):
    B, S, H = x.shape
    I = kp["w1"].shape[1]
    ts = _seq_tile(S)
    kernel = functools.partial(_ffn_kernel, fuse_final_ln=fuse_final_ln)
    in_specs = [
        pl.BlockSpec((1, ts, H), lambda b, s: (b, s, 0)),   # residual input
        _weight_spec((1, H), 4), _weight_spec((1, H), 4),   # ffn LN gamma/beta
        _weight_spec((H, I), 2), _weight_spec((1, I), 4),   # ffn inter (bf16) / bias
        _weight_spec((I, H), 2), _weight_spec((1, H), 4),   # ffn out (bf16) / bias
    ]
    args = [x, kp["ln2_w"], kp["ln2_b"], kp["w1"], kp["b1"], kp["w2"], kp["b2"]]
    if fuse_final_ln:                                        # only on the last layer
        in_specs += [_weight_spec((1, H), 4), _weight_spec((1, H), 4)]
        args += [fin_w, fin_b]
    # TODO(synk): if w1/w2 ever exceed the per-chip VMEM budget even with
    # single-buffered residency, add an "arbitrary" grid axis over I with an
    # f32 accumulator instead of resident FFN weights.
    flops = 4 * B * S * H * I
    bytes_acc = 8 * B * S * H + 4 * H * I + 4 * (4 * H + I)
    return pl.pallas_call(
        kernel,
        out_shape=jax.ShapeDtypeStruct((B, S, H), jnp.float32),
        grid=(B, S // ts),
        in_specs=in_specs,
        out_specs=pl.BlockSpec((1, ts, H), lambda b, s: (b, s, 0)),
        compiler_params=pltpu.CompilerParams(
            dimension_semantics=("parallel", "parallel"),
            vmem_limit_bytes=_vmem_limit()),
        cost_estimate=pl.CostEstimate(flops=flops, transcendentals=2 * B * S,
                                      bytes_accessed=bytes_acc),
    )(*args)


# --------------------------------------------------------------------------
# Glue: embedding, parameter init / one-time kernel-ready prep, full forward
# --------------------------------------------------------------------------
def sinusoidal_pos_emb(max_len, dim):
    pos = np.arange(max_len, dtype=np.float32)[:, None]
    div = np.exp(np.arange(0, dim, 2, dtype=np.float32) * (-math.log(10000.0) / dim))
    pe = np.zeros((max_len, dim), dtype=np.float32)
    pe[:, 0::2] = np.sin(pos * div)
    pe[:, 1::2] = np.cos(pos * div)
    return jnp.asarray(pe)


def init_params(key, *, vocab_size, hidden, intermediate, num_layers,
                max_seq_len, padding_idx):
    def normal(k, shape):
        return 0.02 * jax.random.normal(k, shape, dtype=jnp.float32)

    keys = jax.random.split(key, 2 + num_layers)
    embed = normal(keys[0], (vocab_size, hidden))
    embed = embed.at[padding_idx].set(0.0)

    layers = []
    for li in range(num_layers):
        lk = jax.random.split(keys[2 + li], 4)
        layers.append(dict(
            ln1_w=jnp.ones((1, hidden), jnp.float32),
            ln1_b=jnp.zeros((1, hidden), jnp.float32),
            wqkv=normal(lk[0], (hidden, 3 * hidden)),
            bqkv=jnp.zeros((1, 3 * hidden), jnp.float32),
            wout=normal(lk[1], (hidden, hidden)),
            bout=jnp.zeros((1, hidden), jnp.float32),
            ln2_w=jnp.ones((1, hidden), jnp.float32),
            ln2_b=jnp.zeros((1, hidden), jnp.float32),
            w1=normal(lk[2], (hidden, intermediate)),
            b1=jnp.zeros((1, intermediate), jnp.float32),
            w2=normal(lk[3], (intermediate, hidden)),
            b2=jnp.zeros((1, hidden), jnp.float32),
        ))
    return dict(
        embed=embed,
        pos_emb=sinusoidal_pos_emb(max_seq_len, hidden),
        layers=layers,
        final_ln_w=jnp.ones((1, hidden), jnp.float32),
        final_ln_b=jnp.zeros((1, hidden), jnp.float32),
    )


def prepare_encoder_params(params, *, hidden, nhead):
    """One-time, hoisted out of the forward: fold 1/sqrt(hd) into the Q
    projection, reshape weights into kernel layouts, cast matmul weights to bf16."""
    hd = hidden // nhead
    scale = 1.0 / math.sqrt(hd)
    layers = []
    for p in params["layers"]:
        wqkv = p["wqkv"].at[:, :hidden].multiply(scale)         # (H, 3H)
        bqkv = p["bqkv"].at[:, :hidden].multiply(scale)         # (1, 3H)
        layers.append(dict(
            ln1_w=p["ln1_w"], ln1_b=p["ln1_b"],
            # (3, H, H): chunk c is the q/k/v projection (chunk order _Q,_K,_V)
            wqkv=wqkv.reshape(hidden, 3, hidden).transpose(1, 0, 2).astype(jnp.bfloat16),
            bqkv=bqkv.reshape(3, 1, hidden),
            # (nhead, hd, H): Wout rows grouped per head for the fused out-proj
            wout_r=p["wout"].reshape(nhead, hd, hidden).astype(jnp.bfloat16),
            bout=p["bout"],
            ln2_w=p["ln2_w"], ln2_b=p["ln2_b"],
            w1=p["w1"].astype(jnp.bfloat16), b1=p["b1"],
            w2=p["w2"].astype(jnp.bfloat16), b2=p["b2"],
        ))
    return dict(embed=params["embed"], pos_emb=params["pos_emb"], layers=layers,
                final_ln_w=params["final_ln_w"], final_ln_b=params["final_ln_b"])


def ls_transformer_encoder_forward(src_tokens, prep, *, hidden, nhead, padding_idx):
    B, S = src_tokens.shape
    hd = hidden // nhead
    pad_mask = src_tokens == padding_idx                               # (B, S) bool
    # TODO(synk): LightSeq's embedding layer also applies dropout; identity at inference.
    x = prep["embed"][src_tokens] * math.sqrt(hidden) + prep["pos_emb"][:S]
    x = x.astype(jnp.float32)
    mask_add = jnp.where(pad_mask, -1e9, 0.0).astype(jnp.float32)[:, None, :]  # (B,1,S)

    n_layers = len(prep["layers"])
    for li, kp in enumerate(prep["layers"]):
        qkv = run_ln_qkv(x, kp)                                  # (B, 3, S, H) bf16
        # Layout plumbing (XLA): split heads so kernel B's BlockSpecs deliver
        # lane-clean (tile, hd) per-head slabs with no in-kernel relayout.
        # TODO(synk): fold this relayout into kernel A's store once the
        # (ts,H)->(nhead,ts,hd) Mosaic transpose is validated on all chips.
        qkv = qkv.reshape(B, 3, S, nhead, hd)
        q_h = jnp.transpose(qkv[:, _Q], (0, 2, 1, 3))            # (B, nhead, S, hd)
        k_h = jnp.transpose(qkv[:, _K], (0, 2, 1, 3))
        v_h = jnp.transpose(qkv[:, _V], (0, 2, 1, 3))
        x = run_attention_outproj(x, q_h, k_h, v_h, mask_add, kp)   # (B, S, H) f32
        x = run_ffn(x, kp, prep["final_ln_w"], prep["final_ln_b"],
                    fuse_final_ln=(li == n_layers - 1))
    # TODO(synk): the (B,S,H)->(S,B,H) transpose stays in XLA (layout plumbing).
    return jnp.transpose(x, (1, 0, 2)), pad_mask


# --------------------------------------------------------------------------
# Pure-JAX f32 reference for the correctness check
# --------------------------------------------------------------------------
def _ln_ref(x, w, b):
    mean = x.mean(-1, keepdims=True)
    var = jnp.square(x - mean).mean(-1, keepdims=True)
    return (x - mean) / jnp.sqrt(var + LN_EPS) * w + b


def _ref_layer(x, mask_add, p, nhead):
    B, S, H = x.shape
    hd = H // nhead
    h = _ln_ref(x, p["ln1_w"], p["ln1_b"])
    qkv = h @ p["wqkv"] + p["bqkv"]
    q, k, v = qkv[..., :H], qkv[..., H:2 * H], qkv[..., 2 * H:]
    q = q.reshape(B, S, nhead, hd).transpose(0, 2, 1, 3)
    k = k.reshape(B, S, nhead, hd).transpose(0, 2, 1, 3)
    v = v.reshape(B, S, nhead, hd).transpose(0, 2, 1, 3)
    scores = jnp.einsum("bhqd,bhkd->bhqk", q, k) / math.sqrt(hd)
    scores = scores + mask_add[:, None, :, :]
    attn = jax.nn.softmax(scores, axis=-1)
    ctx = jnp.einsum("bhqk,bhkd->bhqd", attn, v).transpose(0, 2, 1, 3).reshape(B, S, H)
    x = x + ctx @ p["wout"] + p["bout"]
    h2 = _ln_ref(x, p["ln2_w"], p["ln2_b"])
    a = jax.nn.relu(h2 @ p["w1"] + p["b1"])
    return x + a @ p["w2"] + p["b2"]


def _ref_forward(src_tokens, params, *, hidden, nhead, padding_idx):
    B, S = src_tokens.shape
    pad_mask = src_tokens == padding_idx
    x = params["embed"][src_tokens] * math.sqrt(hidden) + params["pos_emb"][:S]
    mask_add = jnp.where(pad_mask, -1e9, 0.0).astype(jnp.float32)[:, None, :]
    for lp in params["layers"]:
        x = _ref_layer(x, mask_add, lp, nhead)
    x = _ln_ref(x, params["final_ln_w"], params["final_ln_b"])
    return jnp.transpose(x, (1, 0, 2)), pad_mask


# --------------------------------------------------------------------------
if __name__ == "__main__":
    BATCH = 2
    SEQ = 8
    HIDDEN = 32
    INTERMEDIATE = 64
    NHEAD = 4
    NUM_LAYERS = 2
    VOCAB = 50
    MAX_SEQ_LEN = 16
    PADDING_IDX = 1

    key = jax.random.PRNGKey(0)
    k_tok, k_par = jax.random.split(key)

    src_tokens = jax.random.randint(k_tok, (BATCH, SEQ), 2, VOCAB, dtype=jnp.int32)
    src_tokens = src_tokens.at[1, -2:].set(PADDING_IDX)   # some padding in sentence 2

    params = init_params(k_par, vocab_size=VOCAB, hidden=HIDDEN,
                         intermediate=INTERMEDIATE, num_layers=NUM_LAYERS,
                         max_seq_len=MAX_SEQ_LEN, padding_idx=PADDING_IDX)
    prep = prepare_encoder_params(params, hidden=HIDDEN, nhead=NHEAD)

    fwd = jax.jit(functools.partial(ls_transformer_encoder_forward,
                                    hidden=HIDDEN, nhead=NHEAD,
                                    padding_idx=PADDING_IDX))
    out, enc_pad_mask = fwd(src_tokens, prep)
    out = jax.block_until_ready(out)

    ref_out, ref_mask = _ref_forward(
        src_tokens, params, hidden=HIDDEN, nhead=NHEAD, padding_idx=PADDING_IDX)

    assert out.shape == (SEQ, BATCH, HIDDEN)
    assert enc_pad_mask.shape == (BATCH, SEQ)
    assert bool(jnp.all(enc_pad_mask == ref_mask))
    # bf16 MXU operands / bf16 exp (f32 accumulation) -> looser tolerance than pure f32.
    np.testing.assert_allclose(np.asarray(out), np.asarray(ref_out),
                               rtol=2e-2, atol=2e-2)
    print("KERNEL_OK")
</pallas_src>

<mosaic_0001>
module attributes {stable_mosaic.version = 11 : i64} {
  func.func @_ln_qkv_kernel(%arg0: i32, %arg1: i32, %arg2: memref<1x8x32xf32, #tpu.memory_space<vmem>>, %arg3: memref<1x32xf32, #tpu.memory_space<vmem>>, %arg4: memref<1x32xf32, #tpu.memory_space<vmem>>, %arg5: memref<3x32x32xbf16, #tpu.memory_space<vmem>>, %arg6: memref<3x1x32xf32, #tpu.memory_space<vmem>>, %arg7: memref<1x3x8x32xbf16, #tpu.memory_space<vmem>>) attributes {dimension_semantics = [#tpu.dimension_semantics<parallel>, #tpu.dimension_semantics<parallel>], iteration_bounds = array<i64: 2, 1>, scalar_prefetch = 0 : i64, scratch_operands = 0 : i64, tpu.core_type = #tpu.core_type<tc>, window_params = [{transform_indices = @transform_0, window_bounds = array<i64: 1, 8, 32>}, {pipeline_mode = #tpu.pipeline_mode<synchronous>, transform_indices = @transform_1, window_bounds = array<i64: 1, 32>}, {pipeline_mode = #tpu.pipeline_mode<synchronous>, transform_indices = @transform_2, window_bounds = array<i64: 1, 32>}, {pipeline_mode = #tpu.pipeline_mode<synchronous>, transform_indices = @transform_3, window_bounds = array<i64: 3, 32, 32>}, {pipeline_mode = #tpu.pipeline_mode<synchronous>, transform_indices = @transform_4, window_bounds = array<i64: 3, 1, 32>}, {transform_indices = @transform_5, window_bounds = array<i64: 1, 3, 8, 32>}]} {
    %c0 = arith.constant 0 : index
    %c0_0 = arith.constant 0 : index
    %c0_1 = arith.constant 0 : index
    %0 = vector.load %arg2[%c0, %c0_0, %c0_1] : memref<1x8x32xf32, #tpu.memory_space<vmem>>, vector<1x8x32xf32>
    %1 = vector.shape_cast %0 : vector<1x8x32xf32> to vector<8x32xf32>
    %c0_2 = arith.constant 0 : index
    %c0_3 = arith.constant 0 : index
    %2 = vector.load %arg3[%c0_2, %c0_3] : memref<1x32xf32, #tpu.memory_space<vmem>>, vector<1x32xf32>
    %c0_4 = arith.constant 0 : index
    %c0_5 = arith.constant 0 : index
    %3 = vector.load %arg4[%c0_4, %c0_5] : memref<1x32xf32, #tpu.memory_space<vmem>>, vector<1x32xf32>
    %cst = arith.constant dense<0.000000e+00> : vector<8xf32>
    %4 = vector.multi_reduction <add>, %1, %cst [1] : vector<8x32xf32> to vector<8xf32>
    %5 = vector.shape_cast %4 : vector<8xf32> to vector<8x1xf32>
    %cst_6 = arith.constant 3.200000e+01 : f32
    %6 = vector.broadcast %cst_6 : f32 to vector<8x1xf32>
    %7 = arith.divf %5, %6 : vector<8x1xf32>
    %8 = vector.broadcast %7 : vector<8x1xf32> to vector<8x32xf32>
    %9 = arith.subf %1, %8 : vector<8x32xf32>
    %10 = arith.mulf %9, %9 : vector<8x32xf32>
    %cst_7 = arith.constant dense<0.000000e+00> : vector<8xf32>
    %11 = vector.multi_reduction <add>, %10, %cst_7 [1] : vector<8x32xf32> to vector<8xf32>
    %12 = vector.shape_cast %11 : vector<8xf32> to vector<8x1xf32>
    %cst_8 = arith.constant 3.200000e+01 : f32
    %13 = vector.broadcast %cst_8 : f32 to vector<8x1xf32>
    %14 = arith.divf %12, %13 : vector<8x1xf32>
    %15 = vector.broadcast %7 : vector<8x1xf32> to vector<8x32xf32>
    %16 = arith.subf %1, %15 : vector<8x32xf32>
    %cst_9 = arith.constant 9.99999974E-6 : f32
    %17 = vector.broadcast %cst_9 : f32 to vector<8x1xf32>
    %18 = arith.addf %14, %17 : vector<8x1xf32>
    %19 = math.rsqrt %18 : vector<8x1xf32>
    %20 = vector.broadcast %19 : vector<8x1xf32> to vector<8x32xf32>
    %21 = arith.mulf %16, %20 : vector<8x32xf32>
    %22 = vector.broadcast %2 : vector<1x32xf32> to vector<8x32xf32>
    %23 = arith.mulf %21, %22 : vector<8x32xf32>
    %24 = vector.broadcast %3 : vector<1x32xf32> to vector<8x32xf32>
    %25 = arith.addf %23, %24 : vector<8x32xf32>
    %26 = arith.truncf %25 : vector<8x32xf32> to vector<8x32xbf16>
    %c0_10 = arith.constant 0 : index
    %c0_11 = arith.constant 0 : index
    %c0_12 = arith.constant 0 : index
    %27 = vector.load %arg5[%c0_10, %c0_11, %c0_12] : memref<3x32x32xbf16, #tpu.memory_space<vmem>>, vector<1x32x32xbf16>
    %28 = vector.shape_cast %27 : vector<1x32x32xbf16> to vector<32x32xbf16>
    %cst_13 = arith.constant dense<0.000000e+00> : vector<8x32xf32>
    %29 = tpu.matmul %26, %28, %cst_13 {dimension_numbers = #tpu.dot_dimension_numbers<[1], [0], [0], [1], [0, 0, 1, 1], [], []>} : vector<8x32xbf16>, vector<32x32xbf16>, vector<8x32xf32> -> vector<8x32xf32>
    %c0_14 = arith.constant 0 : index
    %c0_15 = arith.constant 0 : index
    %c0_16 = arith.constant 0 : index
    %30 = vector.load %arg6[%c0_14, %c0_15, %c0_16] : memref<3x1x32xf32, #tpu.memory_space<vmem>>, vector<1x1x32xf32>
    %31 = vector.shape_cast %30 : vector<1x1x32xf32> to vector<1x32xf32>
    %32 = vector.broadcast %31 : vector<1x32xf32> to vector<8x32xf32>
    %33 = arith.addf %29, %32 : vector<8x32xf32>
    %34 = arith.truncf %33 : vector<8x32xf32> to vector<8x32xbf16>
    %c0_17 = arith.constant 0 : index
    %c0_18 = arith.constant 0 : index
    %c0_19 = arith.constant 0 : index
    %c0_20 = arith.constant 0 : index
    %35 = vector.load %arg7[%c0_17, %c0_18, %c0_19, %c0_20] : memref<1x3x8x32xbf16, #tpu.memory_space<vmem>>, vector<1x1x8x32xbf16>
    %36 = vector.shape_cast %35 : vector<1x1x8x32xbf16> to vector<8x32xbf16>
    %37 = vector.shape_cast %34 : vector<8x32xbf16> to vector<1x1x8x32xbf16>
    tpu.vector_store %arg7[%c0_17, %c0_18, %c0_19, %c0_20], %37 {strides = array<i32>} : memref<1x3x8x32xbf16, #tpu.memory_space<vmem>>, vector<1x1x8x32xbf16>,
    %c1 = arith.constant 1 : index
    %c0_21 = arith.constant 0 : index
    %c0_22 = arith.constant 0 : index
    %38 = vector.load %arg5[%c1, %c0_21, %c0_22] : memref<3x32x32xbf16, #tpu.memory_space<vmem>>, vector<1x32x32xbf16>
    %39 = vector.shape_cast %38 : vector<1x32x32xbf16> to vector<32x32xbf16>
    %cst_23 = arith.constant dense<0.000000e+00> : vector<8x32xf32>
    %40 = tpu.matmul %26, %39, %cst_23 {dimension_numbers = #tpu.dot_dimension_numbers<[1], [0], [0], [1], [0, 0, 1, 1], [], []>} : vector<8x32xbf16>, vector<32x32xbf16>, vector<8x32xf32> -> vector<8x32xf32>
    %c1_24 = arith.constant 1 : index
    %c0_25 = arith.constant 0 : index
    %c0_26 = arith.constant 0 : index
    %41 = vector.load %arg6[%c1_24, %c0_25, %c0_26] : memref<3x1x32xf32, #tpu.memory_space<vmem>>, vector<1x1x32xf32>
    %42 = vector.shape_cast %41 : vector<1x1x32xf32> to vector<1x32xf32>
    %43 = vector.broadcast %42 : vector<1x32xf32> to vector<8x32xf32>
    %44 = arith.addf %40, %43 : vector<8x32xf32>
    %45 = arith.truncf %44 : vector<8x32xf32> to vector<8x32xbf16>
    %c0_27 = arith.constant 0 : index
    %c1_28 = arith.constant 1 : index
    %c0_29 = arith.constant 0 : index
    %c0_30 = arith.constant 0 : index
    %46 = vector.load %arg7[%c0_27, %c1_28, %c0_29, %c0_30] : memref<1x3x8x32xbf16, #tpu.memory_space<vmem>>, vector<1x1x8x32xbf16>
    %47 = vector.shape_cast %46 : vector<1x1x8x32xbf16> to vector<8x32xbf16>
    %48 = vector.shape_cast %45 : vector<8x32xbf16> to vector<1x1x8x32xbf16>
    tpu.vector_store %arg7[%c0_27, %c1_28, %c0_29, %c0_30], %48 {strides = array<i32>} : memref<1x3x8x32xbf16, #tpu.memory_space<vmem>>, vector<1x1x8x32xbf16>,
    %c2 = arith.constant 2 : index
    %c0_31 = arith.constant 0 : index
    %c0_32 = arith.constant 0 : index
    %49 = vector.load %arg5[%c2, %c0_31, %c0_32] : memref<3x32x32xbf16, #tpu.memory_space<vmem>>, vector<1x32x32xbf16>
    %50 = vector.shape_cast %49 : vector<1x32x32xbf16> to vector<32x32xbf16>
    %cst_33 = arith.constant dense<0.000000e+00> : vector<8x32xf32>
    %51 = tpu.matmul %26, %50, %cst_33 {dimension_numbers = #tpu.dot_dimension_numbers<[1], [0], [0], [1], [0, 0, 1, 1], [], []>} : vector<8x32xbf16>, vector<32x32xbf16>, vector<8x32xf32> -> vector<8x32xf32>
    %c2_34 = arith.constant 2 : index
    %c0_35 = arith.constant 0 : index
    %c0_36 = arith.constant 0 : index
    %52 = vector.load %arg6[%c2_34, %c0_35, %c0_36] : memref<3x1x32xf32, #tpu.memory_space<vmem>>, vector<1x1x32xf32>
    %53 = vector.shape_cast %52 : vector<1x1x32xf32> to vector<1x32xf32>
    %54 = vector.broadcast %53 : vector<1x32xf32> to vector<8x32xf32>
    %55 = arith.addf %51, %54 : vector<8x32xf32>
    %56 = arith.truncf %55 : vector<8x32xf32> to vector<8x32xbf16>
    %c0_37 = arith.constant 0 : index
    %c2_38 = arith.constant 2 : index
    %c0_39 = arith.constant 0 : index
    %c0_40 = arith.constant 0 : index
    %57 = vector.load %arg7[%c0_37, %c2_38, %c0_39, %c0_40] : memref<1x3x8x32xbf16, #tpu.memory_space<vmem>>, vector<1x1x8x32xbf16>
    %58 = vector.shape_cast %57 : vector<1x1x8x32xbf16> to vector<8x32xbf16>
    %59 = vector.shape_cast %56 : vector<8x32xbf16> to vector<1x1x8x32xbf16>
    tpu.vector_store %arg7[%c0_37, %c2_38, %c0_39, %c0_40], %59 {strides = array<i32>} : memref<1x3x8x32xbf16, #tpu.memory_space<vmem>>, vector<1x1x8x32xbf16>,
    return
  }
  func.func @transform_0(%arg0: i32, %arg1: i32) -> (i32, i32, i32) {
    %c0_i32 = arith.constant 0 : i32
    %c0_i32_0 = arith.constant 0 : i32
    return %arg0, %arg1, %c0_i32 : i32, i32, i32
  }
  func.func @transform_1(%arg0: i32, %arg1: i32) -> (i32, i32) {
    %c0_i32 = arith.constant 0 : i32
    %c0_i32_0 = arith.constant 0 : i32
    %c0_i32_1 = arith.constant 0 : i32
    return %c0_i32, %c0_i32_0 : i32, i32
  }
  func.func @transform_2(%arg0: i32, %arg1: i32) -> (i32, i32) {
    %c0_i32 = arith.constant 0 : i32
    %c0_i32_0 = arith.constant 0 : i32
    %c0_i32_1 = arith.constant 0 : i32
    return %c0_i32, %c0_i32_0 : i32, i32
  }
  func.func @transform_3(%arg0: i32, %arg1: i32) -> (i32, i32, i32) {
    %c0_i32 = arith.constant 0 : i32
    %c0_i32_0 = arith.constant 0 : i32
    %c0_i32_1 = arith.constant 0 : i32
    %c0_i32_2 = arith.constant 0 : i32
    return %c0_i32, %c0_i32_0, %c0_i32_1 : i32, i32, i32
  }
  func.func @transform_4(%arg0: i32, %arg1: i32) -> (i32, i32, i32) {
    %c0_i32 = arith.constant 0 : i32
    %c0_i32_0 = arith.constant 0 : i32
    %c0_i32_1 = arith.constant 0 : i32
    %c0_i32_2 = arith.constant 0 : i32
    return %c0_i32, %c0_i32_0, %c0_i32_1 : i32, i32, i32
  }
  func.func @transform_5(%arg0: i32, %arg1: i32) -> (i32, i32, i32, i32) {
    %c0_i32 = arith.constant 0 : i32
    %c0_i32_0 = arith.constant 0 : i32
    %c0_i32_1 = arith.constant 0 : i32
    return %arg0, %c0_i32, %arg1, %c0_i32_0 : i32, i32, i32, i32
  }
}

module attributes {stable_mosaic.version = 11 : i64} {
  func.func @_flash_attn_kernel(%arg0: i32, %arg1: i32, %arg2: i32, %arg3: memref<1x8x32xf32, #tpu.memory_space<vmem>>, %arg4: memref<1x4x8x8xbf16, #tpu.memory_space<vmem>>, %arg5: memref<1x4x8x8xbf16, #tpu.memory_space<vmem>>, %arg6: memref<1x4x8x8xbf16, #tpu.memory_space<vmem>>, %arg7: memref<1x1x8xf32, #tpu.memory_space<vmem>>, %arg8: memref<4x8x32xbf16, #tpu.memory_space<vmem>>, %arg9: memref<1x32xf32, #tpu.memory_space<vmem>>, %arg10: memref<1x8x32xf32, #tpu.memory_space<vmem>>, %arg11: memref<4x8x1xf32, #tpu.memory_space<vmem>>, %arg12: memref<4x8x1xf32, #tpu.memory_space<vmem>>, %arg13: memref<4x8x8xf32, #tpu.memory_space<vmem>>) attributes {dimension_semantics = [#tpu.dimension_semantics<parallel>, #tpu.dimension_semantics<parallel>, #tpu.dimension_semantics<arbitrary>], iteration_bounds = array<i64: 2, 1, 1>, scalar_prefetch = 0 : i64, scratch_operands = 3 : i64, tpu.core_type = #tpu.core_type<tc>, window_params = [{transform_indices = @transform_0, window_bounds = array<i64: 1, 8, 32>}, {transform_indices = @transform_1, window_bounds = array<i64: 1, 4, 8, 8>}, {transform_indices = @transform_2, window_bounds = array<i64: 1, 4, 8, 8>}, {transform_indices = @transform_3, window_bounds = array<i64: 1, 4, 8, 8>}, {transform_indices = @transform_4, window_bounds = array<i64: 1, 1, 8>}, {pipeline_mode = #tpu.pipeline_mode<synchronous>, transform_indices = @transform_5, window_bounds = array<i64: 4, 8, 32>}, {pipeline_mode = #tpu.pipeline_mode<synchronous>, transform_indices = @transform_6, window_bounds = array<i64: 1, 32>}, {transform_indices = @transform_7, window_bounds = array<i64: 1, 8, 32>}]} {
    %c0_i32 = arith.constant 0 : i32
    %0 = arith.cmpi eq, %arg2, %c0_i32 : i32
    %1 = arith.extui %0 : i1 to i32
    %c0_i32_0 = arith.constant 0 : i32
    %2 = arith.cmpi ne, %1, %c0_i32_0 : i32
    scf.if %2 {
      %cst_38 = arith.constant 0xFF800000 : f32
      %42 = vector.broadcast %cst_38 : f32 to vector<4x8x1xf32>
      %c0_39 = arith.constant 0 : index
      %c0_40 = arith.constant 0 : index
      %c0_41 = arith.constant 0 : index
      %43 = vector.load %arg11[%c0_39, %c0_40, %c0_41] : memref<4x8x1xf32, #tpu.memory_space<vmem>>, vector<4x8x1xf32>
      tpu.vector_store %arg11[%c0_39, %c0_40, %c0_41], %42 {strides = array<i32>} : memref<4x8x1xf32, #tpu.memory_space<vmem>>, vector<4x8x1xf32>,
      %cst_42 = arith.constant 0.000000e+00 : f32
      %44 = vector.broadcast %cst_42 : f32 to vector<4x8x1xf32>
      %c0_43 = arith.constant 0 : index
      %c0_44 = arith.constant 0 : index
      %c0_45 = arith.constant 0 : index
      %45 = vector.load %arg12[%c0_43, %c0_44, %c0_45] : memref<4x8x1xf32, #tpu.memory_space<vmem>>, vector<4x8x1xf32>
      tpu.vector_store %arg12[%c0_43, %c0_44, %c0_45], %44 {strides = array<i32>} : memref<4x8x1xf32, #tpu.memory_space<vmem>>, vector<4x8x1xf32>,
      %cst_46 = arith.constant 0.000000e+00 : f32
      %46 = vector.broadcast %cst_46 : f32 to vector<4x8x8xf32>
      %c0_47 = arith.constant 0 : index
      %c0_48 = arith.constant 0 : index
      %c0_49 = arith.constant 0 : index
      %47 = vector.load %arg13[%c0_47, %c0_48, %c0_49] : memref<4x8x8xf32, #tpu.memory_space<vmem>>, vector<4x8x8xf32>
      tpu.vector_store %arg13[%c0_47, %c0_48, %c0_49], %46 {strides = array<i32>} : memref<4x8x8xf32, #tpu.memory_space<vmem>>, vector<4x8x8xf32>,
    } else {
    }
    %c0 = arith.constant 0 : index
    %c0_1 = arith.constant 0 : index
    %c0_2 = arith.constant 0 : index
    %c0_3 = arith.constant 0 : index
    %3 = vector.load %arg4[%c0, %c0_1, %c0_2, %c0_3] : memref<1x4x8x8xbf16, #tpu.memory_space<vmem>>, vector<1x4x8x8xbf16>
    %4 = vector.shape_cast %3 : vector<1x4x8x8xbf16> to vector<4x8x8xbf16>
    %c0_4 = arith.constant 0 : index
    %c0_5 = arith.constant 0 : index
    %c0_6 = arith.constant 0 : index
    %c0_7 = arith.constant 0 : index
    %5 = vector.load %arg5[%c0_4, %c0_5, %c0_6, %c0_7] : memref<1x4x8x8xbf16, #tpu.memory_space<vmem>>, vector<1x4x8x8xbf16>
    %6 = vector.shape_cast %5 : vector<1x4x8x8xbf16> to vector<4x8x8xbf16>
    %c0_8 = arith.constant 0 : index
    %c0_9 = arith.constant 0 : index
    %c0_10 = arith.constant 0 : index
    %c0_11 = arith.constant 0 : index
    %7 = vector.load %arg6[%c0_8, %c0_9, %c0_10, %c0_11] : memref<1x4x8x8xbf16, #tpu.memory_space<vmem>>, vector<1x4x8x8xbf16>
    %8 = vector.shape_cast %7 : vector<1x4x8x8xbf16> to vector<4x8x8xbf16>
    "tpu.trace_start"() <{level = 10 : i32, message = "hqd,hkd->hqk"}> : () -> ()
    %cst = arith.constant dense<0.000000e+00> : vector<4x8x8xf32>
    %9 = tpu.matmul %4, %6, %cst {dimension_numbers = #tpu.dot_dimension_numbers<[2], [2], [1], [1], [0, 0, 0, 1, 1, 1], [0], [0]>} : vector<4x8x8xbf16>, vector<4x8x8xbf16>, vector<4x8x8xf32> -> vector<4x8x8xf32>
    "tpu.trace_stop"() : () -> ()
    %c0_12 = arith.constant 0 : index
    %c0_13 = arith.constant 0 : index
    %c0_14 = arith.constant 0 : index
    %10 = vector.load %arg7[%c0_12, %c0_13, %c0_14] : memref<1x1x8xf32, #tpu.memory_space<vmem>>, vector<1x1x8xf32>
    %11 = vector.shape_cast %10 : vector<1x1x8xf32> to vector<1x8xf32>
    %12 = vector.shape_cast %11 : vector<1x8xf32> to vector<1x1x8xf32>
    %13 = vector.broadcast %12 : vector<1x1x8xf32> to vector<4x8x8xf32>
    %14 = arith.addf %9, %13 : vector<4x8x8xf32>
    %c0_15 = arith.constant 0 : index
    %c0_16 = arith.constant 0 : index
    %c0_17 = arith.constant 0 : index
    %15 = vector.load %arg11[%c0_15, %c0_16, %c0_17] : memref<4x8x1xf32, #tpu.memory_space<vmem>>, vector<4x8x1xf32>
    %cst_18 = arith.constant dense<0xFF800000> : vector<4x8xf32>
    %16 = vector.multi_reduction <maximumf>, %14, %cst_18 [2] : vector<4x8x8xf32> to vector<4x8xf32>
    %17 = vector.shape_cast %16 : vector<4x8xf32> to vector<4x8x1xf32>
    %18 = arith.maximumf %15, %17 : vector<4x8x1xf32>
    %19 = arith.subf %15, %18 : vector<4x8x1xf32>
    %20 = math.exp %19 : vector<4x8x1xf32>
    %21 = vector.broadcast %18 : vector<4x8x1xf32> to vector<4x8x8xf32>
    %22 = arith.subf %14, %21 : vector<4x8x8xf32>
    %23 = arith.truncf %22 : vector<4x8x8xf32> to vector<4x8x8xbf16>
    %24 = math.exp %23 : vector<4x8x8xbf16>
    %c0_19 = arith.constant 0 : index
    %c0_20 = arith.constant 0 : index
    %c0_21 = arith.constant 0 : index
    %25 = vector.load %arg12[%c0_19, %c0_20, %c0_21] : memref<4x8x1xf32, #tpu.memory_space<vmem>>, vector<4x8x1xf32>
    %26 = arith.mulf %20, %25 : vector<4x8x1xf32>
    %27 = arith.extf %24 : vector<4x8x8xbf16> to vector<4x8x8xf32>
    %cst_22 = arith.constant dense<0.000000e+00> : vector<4x8xf32>
    %28 = vector.multi_reduction <add>, %27, %cst_22 [2] : vector<4x8x8xf32> to vector<4x8xf32>
    %29 = vector.shape_cast %28 : vector<4x8xf32> to vector<4x8x1xf32>
    %30 = arith.addf %26, %29 : vector<4x8x1xf32>
    %c0_23 = arith.constant 0 : index
    %c0_24 = arith.constant 0 : index
    %c0_25 = arith.constant 0 : index
    %31 = vector.load %arg12[%c0_23, %c0_24, %c0_25] : memref<4x8x1xf32, #tpu.memory_space<vmem>>, vector<4x8x1xf32>
    tpu.vector_store %arg12[%c0_23, %c0_24, %c0_25], %30 {strides = array<i32>} : memref<4x8x1xf32, #tpu.memory_space<vmem>>, vector<4x8x1xf32>,
    %c0_26 = arith.constant 0 : index
    %c0_27 = arith.constant 0 : index
    %c0_28 = arith.constant 0 : index
    %32 = vector.load %arg13[%c0_26, %c0_27, %c0_28] : memref<4x8x8xf32, #tpu.memory_space<vmem>>, vector<4x8x8xf32>
    %33 = vector.broadcast %20 : vector<4x8x1xf32> to vector<4x8x8xf32>
    %34 = arith.mulf %33, %32 : vector<4x8x8xf32>
    "tpu.trace_start"() <{level = 10 : i32, message = "hqk,hkd->hqd"}> : () -> ()
    %cst_29 = arith.constant dense<0.000000e+00> : vector<4x8x8xf32>
    %35 = tpu.matmul %24, %8, %cst_29 {dimension_numbers = #tpu.dot_dimension_numbers<[2], [1], [1], [2], [0, 0, 0, 1, 1, 2], [0], [0]>} : vector<4x8x8xbf16>, vector<4x8x8xbf16>, vector<4x8x8xf32> -> vector<4x8x8xf32>
    "tpu.trace_stop"() : () -> ()
    %36 = arith.addf %34, %35 : vector<4x8x8xf32>
    %c0_30 = arith.constant 0 : index
    %c0_31 = arith.constant 0 : index
    %c0_32 = arith.constant 0 : index
    %37 = vector.load %arg13[%c0_30, %c0_31, %c0_32] : memref<4x8x8xf32, #tpu.memory_space<vmem>>, vector<4x8x8xf32>
    tpu.vector_store %arg13[%c0_30, %c0_31, %c0_32], %36 {strides = array<i32>} : memref<4x8x8xf32, #tpu.memory_space<vmem>>, vector<4x8x8xf32>,
    %c0_33 = arith.constant 0 : index
    %c0_34 = arith.constant 0 : index
    %c0_35 = arith.constant 0 : index
    %38 = vector.load %arg11[%c0_33, %c0_34, %c0_35] : memref<4x8x1xf32, #tpu.memory_space<vmem>>, vector<4x8x1xf32>
    tpu.vector_store %arg11[%c0_33, %c0_34, %c0_35], %18 {strides = array<i32>} : memref<4x8x1xf32, #tpu.memory_space<vmem>>, vector<4x8x1xf32>,
    %c0_i32_36 = arith.constant 0 : i32
    %39 = arith.cmpi eq, %arg2, %c0_i32_36 : i32
    %40 = arith.extui %39 : i1 to i32
    %c0_i32_37 = arith.constant 0 : i32
    %41 = arith.cmpi ne, %40, %c0_i32_37 : i32
    scf.if %41 {
      %c0_38 = arith.constant 0 : index
      %c0_39 = arith.constant 0 : index
      %c0_40 = arith.constant 0 : index
      %42 = vector.load %arg12[%c0_38, %c0_39, %c0_40] : memref<4x8x1xf32, #tpu.memory_space<vmem>>, vector<4x8x1xf32>
      %43 = tpu.reciprocal %42 {approx = true} : vector<4x8x1xf32> -> vector<4x8x1xf32>
      %c0_41 = arith.constant 0 : index
      %c0_42 = arith.constant 0 : index
      %c0_43 = arith.constant 0 : index
      %44 = vector.load %arg3[%c0_41, %c0_42, %c0_43] : memref<1x8x32xf32, #tpu.memory_space<vmem>>, vector<1x8x32xf32>
      %45 = vector.shape_cast %44 : vector<1x8x32xf32> to vector<8x32xf32>
      %c0_44 = arith.constant 0 : index
      %c0_45 = arith.constant 0 : index
      %46 = vector.load %arg9[%c0_44, %c0_45] : memref<1x32xf32, #tpu.memory_space<vmem>>, vector<1x32xf32>
      %47 = vector.broadcast %46 : vector<1x32xf32> to vector<8x32xf32>
      %48 = arith.addf %45, %47 : vector<8x32xf32>
      %c0_46 = arith.constant 0 : index
      %c0_47 = arith.constant 0 : index
      %c0_48 = arith.constant 0 : index
      %49 = vector.load %arg13[%c0_46, %c0_47, %c0_48] : memref<4x8x8xf32, #tpu.memory_space<vmem>>, vector<1x8x8xf32>
      %50 = vector.shape_cast %49 : vector<1x8x8xf32> to vector<8x8xf32>
      %51 = vector.extract_strided_slice %43 {offsets = [0, 0, 0], sizes = [1, 8, 1], strides = [1, 1, 1]} : vector<4x8x1xf32> to vector<1x8x1xf32>
      %52 = vector.shape_cast %51 : vector<1x8x1xf32> to vector<8x1xf32>
      %53 = vector.broadcast %52 : vector<8x1xf32> to vector<8x8xf32>
      %54 = arith.mulf %50, %53 : vector<8x8xf32>
      %55 = arith.truncf %54 : vector<8x8xf32> to vector<8x8xbf16>
      %c0_49 = arith.constant 0 : index
      %c0_50 = arith.constant 0 : index
      %c0_51 = arith.constant 0 : index
      %56 = vector.load %arg8[%c0_49, %c0_50, %c0_51] : memref<4x8x32xbf16, #tpu.memory_space<vmem>>, vector<1x8x32xbf16>
      %57 = vector.shape_cast %56 : vector<1x8x32xbf16> to vector<8x32xbf16>
      %cst_52 = arith.constant dense<0.000000e+00> : vector<8x32xf32>
      %58 = tpu.matmul %55, %57, %cst_52 {dimension_numbers = #tpu.dot_dimension_numbers<[1], [0], [0], [1], [0, 0, 1, 1], [], []>} : vector<8x8xbf16>, vector<8x32xbf16>, vector<8x32xf32> -> vector<8x32xf32>
      %59 = arith.addf %48, %58 : vector<8x32xf32>
      %c1 = arith.constant 1 : index
      %c0_53 = arith.constant 0 : index
      %c0_54 = arith.constant 0 : index
      %60 = vector.load %arg13[%c1, %c0_53, %c0_54] : memref<4x8x8xf32, #tpu.memory_space<vmem>>, vector<1x8x8xf32>
      %61 = vector.shape_cast %60 : vector<1x8x8xf32> to vector<8x8xf32>
      %62 = vector.extract_strided_slice %43 {offsets = [1, 0, 0], sizes = [1, 8, 1], strides = [1, 1, 1]} : vector<4x8x1xf32> to vector<1x8x1xf32>
      %63 = vector.shape_cast %62 : vector<1x8x1xf32> to vector<8x1xf32>
      %64 = vector.broadcast %63 : vector<8x1xf32> to vector<8x8xf32>
      %65 = arith.mulf %61, %64 : vector<8x8xf32>
      %66 = arith.truncf %65 : vector<8x8xf32> to vector<8x8xbf16>
      %c1_55 = arith.constant 1 : index
      %c0_56 = arith.constant 0 : index
      %c0_57 = arith.constant 0 : index
      %67 = vector.load %arg8[%c1_55, %c0_56, %c0_57] : memref<4x8x32xbf16, #tpu.memory_space<vmem>>, vector<1x8x32xbf16>
      %68 = vector.shape_cast %67 : vector<1x8x32xbf16> to vector<8x32xbf16>
      %cst_58 = arith.constant dense<0.000000e+00> : vector<8x32xf32>
      %69 = tpu.matmul %66, %68, %cst_58 {dimension_numbers = #tpu.dot_dimension_numbers<[1], [0], [0], [1], [0, 0, 1, 1], [], []>} : vector<8x8xbf16>, vector<8x32xbf16>, vector<8x32xf32> -> vector<8x32xf32>
      %70 = arith.addf %59, %69 : vector<8x32xf32>
      %c2 = arith.constant 2 : index
      %c0_59 = arith.constant 0 : index
      %c0_60 = arith.constant 0 : index
      %71 = vector.load %arg13[%c2, %c0_59, %c0_60] : memref<4x8x8xf32, #tpu.memory_space<vmem>>, vector<1x8x8xf32>
      %72 = vector.shape_cast %71 : vector<1x8x8xf32> to vector<8x8xf32>
      %73 = vector.extract_strided_slice %43 {offsets = [2, 0, 0], sizes = [1, 8, 1], strides = [1, 1, 1]} : vector<4x8x1xf32> to vector<1x8x1xf32>
      %74 = vector.shape_cast %73 : vector<1x8x1xf32> to vector<8x1xf32>
      %75 = vector.broadcast %74 : vector<8x1xf32> to vector<8x8xf32>
      %76 = arith.mulf %72, %75 : vector<8x8xf32>
      %77 = arith.truncf %76 : vector<8x8xf32> to vector<8x8xbf16>
      %c2_61 = arith.constant 2 : index
      %c0_62 = arith.constant 0 : index
      %c0_63 = arith.constant 0 : index
      %78 = vector.load %arg8[%c2_61, %c0_62, %c0_63] : memref<4x8x32xbf16, #tpu.memory_space<vmem>>, vector<1x8x32xbf16>
      %79 = vector.shape_cast %78 : vector<1x8x32xbf16> to vector<8x32xbf16>
      %cst_64 = arith.constant dense<0.000000e+00> : vector<8x32xf32>
      %80 = tpu.matmul %77, %79, %cst_64 {dimension_numbers = #tpu.dot_dimension_numbers<[1], [0], [0], [1], [0, 0, 1, 1], [], []>} : vector<8x8xbf16>, vector<8x32xbf16>, vector<8x32xf32> -> vector<8x32xf32>
      %81 = arith.addf %70, %80 : vector<8x32xf32>
      %c3 = arith.constant 3 : index
      %c0_65 = arith.constant 0 : index
      %c0_66 = arith.constant 0 : index
      %82 = vector.load %arg13[%c3, %c0_65, %c0_66] : memref<4x8x8xf32, #tpu.memory_space<vmem>>, vector<1x8x8xf32>
      %83 = vector.shape_cast %82 : vector<1x8x8xf32> to vector<8x8xf32>
      %84 = vector.extract_strided_slice %43 {offsets = [3, 0, 0], sizes = [1, 8, 1], strides = [1, 1, 1]} : vector<4x8x1xf32> to vector<1x8x1xf32>
      %85 = vector.shape_cast %84 : vector<1x8x1xf32> to vector<8x1xf32>
      %86 = vector.broadcast %85 : vector<8x1xf32> to vector<8x8xf32>
      %87 = arith.mulf %83, %86 : vector<8x8xf32>
      %88 = arith.truncf %87 : vector<8x8xf32> to vector<8x8xbf16>
      %c3_67 = arith.constant 3 : index
      %c0_68 = arith.constant 0 : index
      %c0_69 = arith.constant 0 : index
      %89 = vector.load %arg8[%c3_67, %c0_68, %c0_69] : memref<4x8x32xbf16, #tpu.memory_space<vmem>>, vector<1x8x32xbf16>
      %90 = vector.shape_cast %89 : vector<1x8x32xbf16> to vector<8x32xbf16>
      %cst_70 = arith.constant dense<0.000000e+00> : vector<8x32xf32>
      %91 = tpu.matmul %88, %90, %cst_70 {dimension_numbers = #tpu.dot_dimension_numbers<[1], [0], [0], [1], [0, 0, 1, 1], [], []>} : vector<8x8xbf16>, vector<8x32xbf16>, vector<8x32xf32> -> vector<8x32xf32>
      %92 = arith.addf %81, %91 : vector<8x32xf32>
      %c0_71 = arith.constant 0 : index
      %c0_72 = arith.constant 0 : index
      %c0_73 = arith.constant 0 : index
      %93 = vector.load %arg10[%c0_71, %c0_72, %c0_73] : memref<1x8x32xf32, #tpu.memory_space<vmem>>, vector<1x8x32xf32>
      %94 = vector.shape_cast %93 : vector<1x8x32xf32> to vector<8x32xf32>
      %95 = vector.shape_cast %92 : vector<8x32xf32> to vector<1x8x32xf32>
      tpu.vector_store %arg10[%c0_71, %c0_72, %c0_73], %95 {strides = array<i32>} : memref<1x8x32xf32, #tpu.memory_space<vmem>>, vector<1x8x32xf32>,
    } else {
    }
    return
  }
  func.func @transform_0(%arg0: i32, %arg1: i32, %arg2: i32) -> (i32, i32, i32) {
    %c0_i32 = arith.constant 0 : i32
    %c0_i32_0 = arith.constant 0 : i32
    return %arg0, %arg1, %c0_i32 : i32, i32, i32
  }
  func.func @transform_1(%arg0: i32, %arg1: i32, %arg2: i32) -> (i32, i32, i32, i32) {
    %c0_i32 = arith.constant 0 : i32
    %c0_i32_0 = arith.constant 0 : i32
    %c0_i32_1 = arith.constant 0 : i32
    return %arg0, %c0_i32, %arg1, %c0_i32_0 : i32, i32, i32, i32
  }
  func.func @transform_2(%arg0: i32, %arg1: i32, %arg2: i32) -> (i32, i32, i32, i32) {
    %c0_i32 = arith.constant 0 : i32
    %c0_i32_0 = arith.constant 0 : i32
    %c0_i32_1 = arith.constant 0 : i32
    return %arg0, %c0_i32, %arg2, %c0_i32_0 : i32, i32, i32, i32
  }
  func.func @transform_3(%arg0: i32, %arg1: i32, %arg2: i32) -> (i32, i32, i32, i32) {
    %c0_i32 = arith.constant 0 : i32
    %c0_i32_0 = arith.constant 0 : i32
    %c0_i32_1 = arith.constant 0 : i32
    return %arg0, %c0_i32, %arg2, %c0_i32_0 : i32, i32, i32, i32
  }
  func.func @transform_4(%arg0: i32, %arg1: i32, %arg2: i32) -> (i32, i32, i32) {
    %c0_i32 = arith.constant 0 : i32
    %c0_i32_0 = arith.constant 0 : i32
    return %arg0, %c0_i32, %arg2 : i32, i32, i32
  }
  func.func @transform_5(%arg0: i32, %arg1: i32, %arg2: i32) -> (i32, i32, i32) {
    %c0_i32 = arith.constant 0 : i32
    %c0_i32_0 = arith.constant 0 : i32
    %c0_i32_1 = arith.constant 0 : i32
    %c0_i32_2 = arith.constant 0 : i32
    return %c0_i32, %c0_i32_0, %c0_i32_1 : i32, i32, i32
  }
  func.func @transform_6(%arg0: i32, %arg1: i32, %arg2: i32) -> (i32, i32) {
    %c0_i32 = arith.constant 0 : i32
    %c0_i32_0 = arith.constant 0 : i32
    %c0_i32_1 = arith.constant 0 : i32
    return %c0_i32, %c0_i32_0 : i32, i32
  }
  func.func @transform_7(%arg0: i32, %arg1: i32, %arg2: i32) -> (i32, i32, i32) {
    %c0_i32 = arith.constant 0 : i32
    %c0_i32_0 = arith.constant 0 : i32
    return %arg0, %arg1, %c0_i32 : i32, i32, i32
  }
}

module attributes {stable_mosaic.version = 11 : i64} {
  func.func @_ffn_kernel(%arg0: i32, %arg1: i32, %arg2: memref<1x8x32xf32, #tpu.memory_space<vmem>>, %arg3: memref<1x32xf32, #tpu.memory_space<vmem>>, %arg4: memref<1x32xf32, #tpu.memory_space<vmem>>, %arg5: memref<32x64xbf16, #tpu.memory_space<vmem>>, %arg6: memref<1x64xf32, #tpu.memory_space<vmem>>, %arg7: memref<64x32xbf16, #tpu.memory_space<vmem>>, %arg8: memref<1x32xf32, #tpu.memory_space<vmem>>, %arg9: memref<1x8x32xf32, #tpu.memory_space<vmem>>) attributes {dimension_semantics = [#tpu.dimension_semantics<parallel>, #tpu.dimension_semantics<parallel>], iteration_bounds = array<i64: 2, 1>, scalar_prefetch = 0 : i64, scratch_operands = 0 : i64, tpu.core_type = #tpu.core_type<tc>, window_params = [{transform_indices = @transform_0, window_bounds = array<i64: 1, 8, 32>}, {pipeline_mode = #tpu.pipeline_mode<synchronous>, transform_indices = @transform_1, window_bounds = array<i64: 1, 32>}, {pipeline_mode = #tpu.pipeline_mode<synchronous>, transform_indices = @transform_2, window_bounds = array<i64: 1, 32>}, {pipeline_mode = #tpu.pipeline_mode<synchronous>, transform_indices = @transform_3, window_bounds = array<i64: 32, 64>}, {pipeline_mode = #tpu.pipeline_mode<synchronous>, transform_indices = @transform_4, window_bounds = array<i64: 1, 64>}, {pipeline_mode = #tpu.pipeline_mode<synchronous>, transform_indices = @transform_5, window_bounds = array<i64: 64, 32>}, {pipeline_mode = #tpu.pipeline_mode<synchronous>, transform_indices = @transform_6, window_bounds = array<i64: 1, 32>}, {transform_indices = @transform_7, window_bounds = array<i64: 1, 8, 32>}]} {
    %c0 = arith.constant 0 : index
    %c0_0 = arith.constant 0 : index
    %c0_1 = arith.constant 0 : index
    %0 = vector.load %arg2[%c0, %c0_0, %c0_1] : memref<1x8x32xf32, #tpu.memory_space<vmem>>, vector<1x8x32xf32>
    %1 = vector.shape_cast %0 : vector<1x8x32xf32> to vector<8x32xf32>
    %c0_2 = arith.constant 0 : index
    %c0_3 = arith.constant 0 : index
    %2 = vector.load %arg3[%c0_2, %c0_3] : memref<1x32xf32, #tpu.memory_space<vmem>>, vector<1x32xf32>
    %c0_4 = arith.constant 0 : index
    %c0_5 = arith.constant 0 : index
    %3 = vector.load %arg4[%c0_4, %c0_5] : memref<1x32xf32, #tpu.memory_space<vmem>>, vector<1x32xf32>
    %cst = arith.constant dense<0.000000e+00> : vector<8xf32>
    %4 = vector.multi_reduction <add>, %1, %cst [1] : vector<8x32xf32> to vector<8xf32>
    %5 = vector.shape_cast %4 : vector<8xf32> to vector<8x1xf32>
    %cst_6 = arith.constant 3.200000e+01 : f32
    %6 = vector.broadcast %cst_6 : f32 to vector<8x1xf32>
    %7 = arith.divf %5, %6 : vector<8x1xf32>
    %8 = vector.broadcast %7 : vector<8x1xf32> to vector<8x32xf32>
    %9 = arith.subf %1, %8 : vector<8x32xf32>
    %10 = arith.mulf %9, %9 : vector<8x32xf32>
    %cst_7 = arith.constant dense<0.000000e+00> : vector<8xf32>
    %11 = vector.multi_reduction <add>, %10, %cst_7 [1] : vector<8x32xf32> to vector<8xf32>
    %12 = vector.shape_cast %11 : vector<8xf32> to vector<8x1xf32>
    %cst_8 = arith.constant 3.200000e+01 : f32
    %13 = vector.broadcast %cst_8 : f32 to vector<8x1xf32>
    %14 = arith.divf %12, %13 : vector<8x1xf32>
    %15 = vector.broadcast %7 : vector<8x1xf32> to vector<8x32xf32>
    %16 = arith.subf %1, %15 : vector<8x32xf32>
    %cst_9 = arith.constant 9.99999974E-6 : f32
    %17 = vector.broadcast %cst_9 : f32 to vector<8x1xf32>
    %18 = arith.addf %14, %17 : vector<8x1xf32>
    %19 = math.rsqrt %18 : vector<8x1xf32>
    %20 = vector.broadcast %19 : vector<8x1xf32> to vector<8x32xf32>
    %21 = arith.mulf %16, %20 : vector<8x32xf32>
    %22 = vector.broadcast %2 : vector<1x32xf32> to vector<8x32xf32>
    %23 = arith.mulf %21, %22 : vector<8x32xf32>
    %24 = vector.broadcast %3 : vector<1x32xf32> to vector<8x32xf32>
    %25 = arith.addf %23, %24 : vector<8x32xf32>
    %26 = arith.truncf %25 : vector<8x32xf32> to vector<8x32xbf16>
    %c0_10 = arith.constant 0 : index
    %c0_11 = arith.constant 0 : index
    %27 = vector.load %arg5[%c0_10, %c0_11] : memref<32x64xbf16, #tpu.memory_space<vmem>>, vector<32x64xbf16>
    %cst_12 = arith.constant dense<0.000000e+00> : vector<8x64xf32>
    %28 = tpu.matmul %26, %27, %cst_12 {dimension_numbers = #tpu.dot_dimension_numbers<[1], [0], [0], [1], [0, 0, 1, 1], [], []>} : vector<8x32xbf16>, vector<32x64xbf16>, vector<8x64xf32> -> vector<8x64xf32>
    %c0_13 = arith.constant 0 : index
    %c0_14 = arith.constant 0 : index
    %29 = vector.load %arg6[%c0_13, %c0_14] : memref<1x64xf32, #tpu.memory_space<vmem>>, vector<1x64xf32>
    %30 = vector.broadcast %29 : vector<1x64xf32> to vector<8x64xf32>
    %31 = arith.addf %28, %30 : vector<8x64xf32>
    %cst_15 = arith.constant 0.000000e+00 : f32
    %32 = vector.broadcast %cst_15 : f32 to vector<8x64xf32>
    %33 = arith.maximumf %31, %32 : vector<8x64xf32>
    %34 = arith.truncf %33 : vector<8x64xf32> to vector<8x64xbf16>
    %c0_16 = arith.constant 0 : index
    %c0_17 = arith.constant 0 : index
    %35 = vector.load %arg7[%c0_16, %c0_17] : memref<64x32xbf16, #tpu.memory_space<vmem>>, vector<64x32xbf16>
    %cst_18 = arith.constant dense<0.000000e+00> : vector<8x32xf32>
    %36 = tpu.matmul %34, %35, %cst_18 {dimension_numbers = #tpu.dot_dimension_numbers<[1], [0], [0], [1], [0, 0, 1, 1], [], []>} : vector<8x64xbf16>, vector<64x32xbf16>, vector<8x32xf32> -> vector<8x32xf32>
    %37 = arith.addf %1, %36 : vector<8x32xf32>
    %c0_19 = arith.constant 0 : index
    %c0_20 = arith.constant 0 : index
    %38 = vector.load %arg8[%c0_19, %c0_20] : memref<1x32xf32, #tpu.memory_space<vmem>>, vector<1x32xf32>
    %39 = vector.broadcast %38 : vector<1x32xf32> to vector<8x32xf32>
    %40 = arith.addf %37, %39 : vector<8x32xf32>
    %c0_21 = arith.constant 0 : index
    %c0_22 = arith.constant 0 : index
    %c0_23 = arith.constant 0 : index
    %41 = vector.load %arg9[%c0_21, %c0_22, %c0_23] : memref<1x8x32xf32, #tpu.memory_space<vmem>>, vector<1x8x32xf32>
    %42 = vector.shape_cast %41 : vector<1x8x32xf32> to vector<8x32xf32>
    %43 = vector.shape_cast %40 : vector<8x32xf32> to vector<1x8x32xf32>
    tpu.vector_store %arg9[%c0_21, %c0_22, %c0_23], %43 {strides = array<i32>} : memref<1x8x32xf32, #tpu.memory_space<vmem>>, vector<1x8x32xf32>,
    return
  }
  func.func @transform_0(%arg0: i32, %arg1: i32) -> (i32, i32, i32) {
    %c0_i32 = arith.constant 0 : i32
    %c0_i32_0 = arith.constant 0 : i32
    return %arg0, %arg1, %c0_i32 : i32, i32, i32
  }
  func.func @transform_1(%arg0: i32, %arg1: i32) -> (i32, i32) {
    %c0_i32 = arith.constant 0 : i32
    %c0_i32_0 = arith.constant 0 : i32
    %c0_i32_1 = arith.constant 0 : i32
    return %c0_i32, %c0_i32_0 : i32, i32
  }
  func.func @transform_2(%arg0: i32, %arg1: i32) -> (i32, i32) {
    %c0_i32 = arith.constant 0 : i32
    %c0_i32_0 = arith.constant 0 : i32
    %c0_i32_1 = arith.constant 0 : i32
    return %c0_i32, %c0_i32_0 : i32, i32
  }
  func.func @transform_3(%arg0: i32, %arg1: i32) -> (i32, i32) {
    %c0_i32 = arith.constant 0 : i32
    %c0_i32_0 = arith.constant 0 : i32
    %c0_i32_1 = arith.constant 0 : i32
    return %c0_i32, %c0_i32_0 : i32, i32
  }
  func.func @transform_4(%arg0: i32, %arg1: i32) -> (i32, i32) {
    %c0_i32 = arith.constant 0 : i32
    %c0_i32_0 = arith.constant 0 : i32
    %c0_i32_1 = arith.constant 0 : i32
    return %c0_i32, %c0_i32_0 : i32, i32
  }
  func.func @transform_5(%arg0: i32, %arg1: i32) -> (i32, i32) {
    %c0_i32 = arith.constant 0 : i32
    %c0_i32_0 = arith.constant 0 : i32
    %c0_i32_1 = arith.constant 0 : i32
    return %c0_i32, %c0_i32_0 : i32, i32
  }
  func.func @transform_6(%arg0: i32, %arg1: i32) -> (i32, i32) {
    %c0_i32 = arith.constant 0 : i32
    %c0_i32_0 = arith.constant 0 : i32
    %c0_i32_1 = arith.constant 0 : i32
    return %c0_i32, %c0_i32_0 : i32, i32
  }
  func.func @transform_7(%arg0: i32, %arg1: i32) -> (i32, i32, i32) {
    %c0_i32 = arith.constant 0 : i32
    %c0_i32_0 = arith.constant 0 : i32
    return %arg0, %arg1, %c0_i32 : i32, i32, i32
  }
}

module attributes {stable_mosaic.version = 11 : i64} {
  func.func @_ffn_kernel(%arg0: i32, %arg1: i32, %arg2: memref<1x8x32xf32, #tpu.memory_space<vmem>>, %arg3: memref<1x32xf32, #tpu.memory_space<vmem>>, %arg4: memref<1x32xf32, #tpu.memory_space<vmem>>, %arg5: memref<32x64xbf16, #tpu.memory_space<vmem>>, %arg6: memref<1x64xf32, #tpu.memory_space<vmem>>, %arg7: memref<64x32xbf16, #tpu.memory_space<vmem>>, %arg8: memref<1x32xf32, #tpu.memory_space<vmem>>, %arg9: memref<1x32xf32, #tpu.memory_space<vmem>>, %arg10: memref<1x32xf32, #tpu.memory_space<vmem>>, %arg11: memref<1x8x32xf32, #tpu.memory_space<vmem>>) attributes {dimension_semantics = [#tpu.dimension_semantics<parallel>, #tpu.dimension_semantics<parallel>], iteration_bounds = array<i64: 2, 1>, scalar_prefetch = 0 : i64, scratch_operands = 0 : i64, tpu.core_type = #tpu.core_type<tc>, window_params = [{transform_indices = @transform_0, window_bounds = array<i64: 1, 8, 32>}, {pipeline_mode = #tpu.pipeline_mode<synchronous>, transform_indices = @transform_1, window_bounds = array<i64: 1, 32>}, {pipeline_mode = #tpu.pipeline_mode<synchronous>, transform_indices = @transform_2, window_bounds = array<i64: 1, 32>}, {pipeline_mode = #tpu.pipeline_mode<synchronous>, transform_indices = @transform_3, window_bounds = array<i64: 32, 64>}, {pipeline_mode = #tpu.pipeline_mode<synchronous>, transform_indices = @transform_4, window_bounds = array<i64: 1, 64>}, {pipeline_mode = #tpu.pipeline_mode<synchronous>, transform_indices = @transform_5, window_bounds = array<i64: 64, 32>}, {pipeline_mode = #tpu.pipeline_mode<synchronous>, transform_indices = @transform_6, window_bounds = array<i64: 1, 32>}, {pipeline_mode = #tpu.pipeline_mode<synchronous>, transform_indices = @transform_7, window_bounds = array<i64: 1, 32>}, {pipeline_mode = #tpu.pipeline_mode<synchronous>, transform_indices = @transform_8, window_bounds = array<i64: 1, 32>}, {transform_indices = @transform_9, window_bounds = array<i64: 1, 8, 32>}]} {
    %c0 = arith.constant 0 : index
    %c0_0 = arith.constant 0 : index
    %c0_1 = arith.constant 0 : index
    %0 = vector.load %arg2[%c0, %c0_0, %c0_1] : memref<1x8x32xf32, #tpu.memory_space<vmem>>, vector<1x8x32xf32>
    %1 = vector.shape_cast %0 : vector<1x8x32xf32> to vector<8x32xf32>
    %c0_2 = arith.constant 0 : index
    %c0_3 = arith.constant 0 : index
    %2 = vector.load %arg3[%c0_2, %c0_3] : memref<1x32xf32, #tpu.memory_space<vmem>>, vector<1x32xf32>
    %c0_4 = arith.constant 0 : index
    %c0_5 = arith.constant 0 : index
    %3 = vector.load %arg4[%c0_4, %c0_5] : memref<1x32xf32, #tpu.memory_space<vmem>>, vector<1x32xf32>
    %cst = arith.constant dense<0.000000e+00> : vector<8xf32>
    %4 = vector.multi_reduction <add>, %1, %cst [1] : vector<8x32xf32> to vector<8xf32>
    %5 = vector.shape_cast %4 : vector<8xf32> to vector<8x1xf32>
    %cst_6 = arith.constant 3.200000e+01 : f32
    %6 = vector.broadcast %cst_6 : f32 to vector<8x1xf32>
    %7 = arith.divf %5, %6 : vector<8x1xf32>
    %8 = vector.broadcast %7 : vector<8x1xf32> to vector<8x32xf32>
    %9 = arith.subf %1, %8 : vector<8x32xf32>
    %10 = arith.mulf %9, %9 : vector<8x32xf32>
    %cst_7 = arith.constant dense<0.000000e+00> : vector<8xf32>
    %11 = vector.multi_reduction <add>, %10, %cst_7 [1] : vector<8x32xf32> to vector<8xf32>
    %12 = vector.shape_cast %11 : vector<8xf32> to vector<8x1xf32>
    %cst_8 = arith.constant 3.200000e+01 : f32
    %13 = vector.broadcast %cst_8 : f32 to vector<8x1xf32>
    %14 = arith.divf %12, %13 : vector<8x1xf32>
    %15 = vector.broadcast %7 : vector<8x1xf32> to vector<8x32xf32>
    %16 = arith.subf %1, %15 : vector<8x32xf32>
    %cst_9 = arith.constant 9.99999974E-6 : f32
    %17 = vector.broadcast %cst_9 : f32 to vector<8x1xf32>
    %18 = arith.addf %14, %17 : vector<8x1xf32>
    %19 = math.rsqrt %18 : vector<8x1xf32>
    %20 = vector.broadcast %19 : vector<8x1xf32> to vector<8x32xf32>
    %21 = arith.mulf %16, %20 : vector<8x32xf32>
    %22 = vector.broadcast %2 : vector<1x32xf32> to vector<8x32xf32>
    %23 = arith.mulf %21, %22 : vector<8x32xf32>
    %24 = vector.broadcast %3 : vector<1x32xf32> to vector<8x32xf32>
    %25 = arith.addf %23, %24 : vector<8x32xf32>
    %26 = arith.truncf %25 : vector<8x32xf32> to vector<8x32xbf16>
    %c0_10 = arith.constant 0 : index
    %c0_11 = arith.constant 0 : index
    %27 = vector.load %arg5[%c0_10, %c0_11] : memref<32x64xbf16, #tpu.memory_space<vmem>>, vector<32x64xbf16>
    %cst_12 = arith.constant dense<0.000000e+00> : vector<8x64xf32>
    %28 = tpu.matmul %26, %27, %cst_12 {dimension_numbers = #tpu.dot_dimension_numbers<[1], [0], [0], [1], [0, 0, 1, 1], [], []>} : vector<8x32xbf16>, vector<32x64xbf16>, vector<8x64xf32> -> vector<8x64xf32>
    %c0_13 = arith.constant 0 : index
    %c0_14 = arith.constant 0 : index
    %29 = vector.load %arg6[%c0_13, %c0_14] : memref<1x64xf32, #tpu.memory_space<vmem>>, vector<1x64xf32>
    %30 = vector.broadcast %29 : vector<1x64xf32> to vector<8x64xf32>
    %31 = arith.addf %28, %30 : vector<8x64xf32>
    %cst_15 = arith.constant 0.000000e+00 : f32
    %32 = vector.broadcast %cst_15 : f32 to vector<8x64xf32>
    %33 = arith.maximumf %31, %32 : vector<8x64xf32>
    %34 = arith.truncf %33 : vector<8x64xf32> to vector<8x64xbf16>
    %c0_16 = arith.constant 0 : index
    %c0_17 = arith.constant 0 : index
    %35 = vector.load %arg7[%c0_16, %c0_17] : memref<64x32xbf16, #tpu.memory_space<vmem>>, vector<64x32xbf16>
    %cst_18 = arith.constant dense<0.000000e+00> : vector<8x32xf32>
    %36 = tpu.matmul %34, %35, %cst_18 {dimension_numbers = #tpu.dot_dimension_numbers<[1], [0], [0], [1], [0, 0, 1, 1], [], []>} : vector<8x64xbf16>, vector<64x32xbf16>, vector<8x32xf32> -> vector<8x32xf32>
    %37 = arith.addf %1, %36 : vector<8x32xf32>
    %c0_19 = arith.constant 0 : index
    %c0_20 = arith.constant 0 : index
    %38 = vector.load %arg8[%c0_19, %c0_20] : memref<1x32xf32, #tpu.memory_space<vmem>>, vector<1x32xf32>
    %39 = vector.broadcast %38 : vector<1x32xf32> to vector<8x32xf32>
    %40 = arith.addf %37, %39 : vector<8x32xf32>
    %c0_21 = arith.constant 0 : index
    %c0_22 = arith.constant 0 : index
    %41 = vector.load %arg9[%c0_21, %c0_22] : memref<1x32xf32, #tpu.memory_space<vmem>>, vector<1x32xf32>
    %c0_23 = arith.constant 0 : index
    %c0_24 = arith.constant 0 : index
    %42 = vector.load %arg10[%c0_23, %c0_24] : memref<1x32xf32, #tpu.memory_space<vmem>>, vector<1x32xf32>
    %cst_25 = arith.constant dense<0.000000e+00> : vector<8xf32>
    %43 = vector.multi_reduction <add>, %40, %cst_25 [1] : vector<8x32xf32> to vector<8xf32>
    %44 = vector.shape_cast %43 : vector<8xf32> to vector<8x1xf32>
    %cst_26 = arith.constant 3.200000e+01 : f32
    %45 = vector.broadcast %cst_26 : f32 to vector<8x1xf32>
    %46 = arith.divf %44, %45 : vector<8x1xf32>
    %47 = vector.broadcast %46 : vector<8x1xf32> to vector<8x32xf32>
    %48 = arith.subf %40, %47 : vector<8x32xf32>
    %49 = arith.mulf %48, %48 : vector<8x32xf32>
    %cst_27 = arith.constant dense<0.000000e+00> : vector<8xf32>
    %50 = vector.multi_reduction <add>, %49, %cst_27 [1] : vector<8x32xf32> to vector<8xf32>
    %51 = vector.shape_cast %50 : vector<8xf32> to vector<8x1xf32>
    %cst_28 = arith.constant 3.200000e+01 : f32
    %52 = vector.broadcast %cst_28 : f32 to vector<8x1xf32>
    %53 = arith.divf %51, %52 : vector<8x1xf32>
    %54 = vector.broadcast %46 : vector<8x1xf32> to vector<8x32xf32>
    %55 = arith.subf %40, %54 : vector<8x32xf32>
    %cst_29 = arith.constant 9.99999974E-6 : f32
    %56 = vector.broadcast %cst_29 : f32 to vector<8x1xf32>
    %57 = arith.addf %53, %56 : vector<8x1xf32>
    %58 = math.rsqrt %57 : vector<8x1xf32>
    %59 = vector.broadcast %58 : vector<8x1xf32> to vector<8x32xf32>
    %60 = arith.mulf %55, %59 : vector<8x32xf32>
    %61 = vector.broadcast %41 : vector<1x32xf32> to vector<8x32xf32>
    %62 = arith.mulf %60, %61 : vector<8x32xf32>
    %63 = vector.broadcast %42 : vector<1x32xf32> to vector<8x32xf32>
    %64 = arith.addf %62, %63 : vector<8x32xf32>
    %c0_30 = arith.constant 0 : index
    %c0_31 = arith.constant 0 : index
    %c0_32 = arith.constant 0 : index
    %65 = vector.load %arg11[%c0_30, %c0_31, %c0_32] : memref<1x8x32xf32, #tpu.memory_space<vmem>>, vector<1x8x32xf32>
    %66 = vector.shape_cast %65 : vector<1x8x32xf32> to vector<8x32xf32>
    %67 = vector.shape_cast %64 : vector<8x32xf32> to vector<1x8x32xf32>
    tpu.vector_store %arg11[%c0_30, %c0_31, %c0_32], %67 {strides = array<i32>} : memref<1x8x32xf32, #tpu.memory_space<vmem>>, vector<1x8x32xf32>,
    return
  }
  func.func @transform_0(%arg0: i32, %arg1: i32) -> (i32, i32, i32) {
    %c0_i32 = arith.constant 0 : i32
    %c0_i32_0 = arith.constant 0 : i32
    return %arg0, %arg1, %c0_i32 : i32, i32, i32
  }
  func.func @transform_1(%arg0: i32, %arg1: i32) -> (i32, i32) {
    %c0_i32 = arith.constant 0 : i32
    %c0_i32_0 = arith.constant 0 : i32
    %c0_i32_1 = arith.constant 0 : i32
    return %c0_i32, %c0_i32_0 : i32, i32
  }
  func.func @transform_2(%arg0: i32, %arg1: i32) -> (i32, i32) {
    %c0_i32 = arith.constant 0 : i32
    %c0_i32_0 = arith.constant 0 : i32
    %c0_i32_1 = arith.constant 0 : i32
    return %c0_i32, %c0_i32_0 : i32, i32
  }
  func.func @transform_3(%arg0: i32, %arg1: i32) -> (i32, i32) {
    %c0_i32 = arith.constant 0 : i32
    %c0_i32_0 = arith.constant 0 : i32
    %c0_i32_1 = arith.constant 0 : i32
    return %c0_i32, %c0_i32_0 : i32, i32
  }
  func.func @transform_4(%arg0: i32, %arg1: i32) -> (i32, i32) {
    %c0_i32 = arith.constant 0 : i32
    %c0_i32_0 = arith.constant 0 : i32
    %c0_i32_1 = arith.constant 0 : i32
    return %c0_i32, %c0_i32_0 : i32, i32
  }
  func.func @transform_5(%arg0: i32, %arg1: i32) -> (i32, i32) {
    %c0_i32 = arith.constant 0 : i32
    %c0_i32_0 = arith.constant 0 : i32
    %c0_i32_1 = arith.constant 0 : i32
    return %c0_i32, %c0_i32_0 : i32, i32
  }
  func.func @transform_6(%arg0: i32, %arg1: i32) -> (i32, i32) {
    %c0_i32 = arith.constant 0 : i32
    %c0_i32_0 = arith.constant 0 : i32
    %c0_i32_1 = arith.constant 0 : i32
    return %c0_i32, %c0_i32_0 : i32, i32
  }
  func.func @transform_7(%arg0: i32, %arg1: i32) -> (i32, i32) {
    %c0_i32 = arith.constant 0 : i32
    %c0_i32_0 = arith.constant 0 : i32
    %c0_i32_1 = arith.constant 0 : i32
    return %c0_i32, %c0_i32_0 : i32, i32
  }
  func.func @transform_8(%arg0: i32, %arg1: i32) -> (i32, i32) {
    %c0_i32 = arith.constant 0 : i32
    %c0_i32_0 = arith.constant 0 : i32
    %c0_i32_1 = arith.constant 0 : i32
    return %c0_i32, %c0_i32_0 : i32, i32
  }
  func.func @transform_9(%arg0: i32, %arg1: i32) -> (i32, i32, i32) {
    %c0_i32 = arith.constant 0 : i32
    %c0_i32_0 = arith.constant 0 : i32
    return %arg0, %arg1, %c0_i32 : i32, i32, i32
  }
}

</mosaic_0001>

<bundles_post_ra>
// kernel: ls_transformer_encoder_forward.8
= control target key start
LH: loop header
LB: loop body
LE: loop exit
PB: predicated region body
PF: predicated region fallthrough
CT: control target
= control target key end

     0   :  { %s655_s24 = smov 0   ;;  %s657_s25 = smov 0   ;;  %s729_s0 = inlined_call_operand.vmem [shape: f32[2,8,32], index: 0, kind: input, shape index: {}]   ;;  %s730_s1 = inlined_call_operand.vmem [shape: f32[1,32], index: 1, kind: input, shape index: {}]   ;;  %s731_s2 = inlined_call_operand.vmem [shape: f32[1,32], index: 2, kind: input, shape index: {}]   ;;  %s732_s3 = inlined_call_operand.vmem [shape: bf16[32,64], index: 3, kind: input, shape index: {}]   ;;  %s733_s4 = inlined_call_operand.vmem [shape: f32[1,64], index: 4, kind: input, shape index: {}]   ;;  %s734_s5 = inlined_call_operand.vmem [shape: bf16[64,32], index: 5, kind: input, shape index: {}]   ;;  %s735_s6 = inlined_call_operand.vmem [shape: f32[1,32], index: 6, kind: input, shape index: {}]   ;;  %s736_s7 = inlined_call_operand.vmem [shape: f32[2,8,32], index: 7, kind: output, shape index: {}]  }
   0x1   :  { %s659_s26 = smov 0  }
   0x2 LB: > { %s29_s27 = sadd.s32 1, %s608_s25  ;;  %p520_p0 = scmp.ge.s32.totalorder %s612_s26, 1  ;;  %s612_s26 = sphi %s659_s26, %s17_s26   ;;  %s608_s25 = sphi %s657_s25, %s738_s25   ;;  %s604_s24 = sphi %s655_s24, %s737_s24  }
   0x3   : > { %p31_p1 = scmp.ge.s32.totalorder %s29_s27, 2  ;;  %p255_p2 = scmp.lt.s32.totalorder %s612_s26, 3 }
   0x5   : > { %s740_s27 = smov (%p31_p1, %s29_s27), 0  ;;  %p256_p3 = pnand %p520_p0, %p255_p2 }
   0x6   : > { %p291_p4 = scmp.lt.s32.totalorder (!%p256_p3), %s604_s24, 1 }
   0x7   : > { %259 = sbr.rel (%p256_p3) target bundleno = 552 (0x228), region = 48 }
   0xc   : > { %s742_s24 = smov (!%p291_p4, %s604_s24), 1  ;;  %vm309_vm0 = vcmask 261120   ;;  %v614_v2 = vmov 32.0   ;;  %v552_v14 = vld [vmem:[%s732_s3 + $0x8] sm:$0xff]  ;;  %v551_v15 = vld [vmem:[%s732_s3] sm:$0xff]  ;;  %v556_v16 = vld [vmem:[%s734_s5 + $0x18] sm:$0xff] }
   0xd   : > { %s521_s28 = sshll.u32 %s742_s24, 3  ;;  %586 = vrcp.f32 %v614_v2  ;;  %377 = vmatpush.bf16.msra.mxu0 %v552_v14  ;;  %426 = vmatpush.bf16.msra.mxu1 %v556_v16  ;;  %v555_v19 = vld [vmem:[%s734_s5 + $0x10] sm:$0xff]  ;;  %v582_v27 = vld [vmem:[%s730_s1] ss:$0 sm:$0xff]  ;;  %v554_v34 = vld [vmem:[%s734_s5 + $0x8] sm:$0xff]  ;;  %vm418_vm5 = vcmask 523264  }
   0xe   : > { %s297_s8 = scalar_lea.vmem %s729_s0, %s521_s28  ;;  %v583_v30 = vld [vmem:[%s731_s2] ss:$0 sm:$0xff]  ;;  %s304_s13 = scalar_lea.vmem %s736_s7, %s521_s28 }
   0xf   : > { %v306_v0 = vld [vmem:[%s297_s8] sm:$0xff] }
  0x10   : > { %v310_v1 = vsel %vm309_vm0, %v306_v0, 0.0  ;;  %v553_v35 = vld [vmem:[%s734_s5] sm:$0xff] }
  0x11   : > { %311 = vadd.xlane.f32.xlu0 %v310_v1  ;;  %378 = vmatpush.bf16.msra.mxu0 %v551_v15  ;;  %v584_v36 = vld [vmem:[%s733_s4] ss:$0 sm:$0xff] }
  0x12   : > { %427 = vmatpush.bf16.msra.mxu1 %v555_v19  ;;  %v585_v42 = vld [vmem:[%s735_s6] ss:$0 sm:$0xff] }
  0x13   : > { %v587_v3 = vpop.eup %586 }
  0x14   : > { %v314_v4 = vmul.f32 32.0, %v587_v3  ;;  %vm318_vm1 = vweird.f32 %v587_v3 }
  0x16   : > { %v315_v5 = vsub.f32 1.0, %v314_v4  ;;  %428 = vmatpush.bf16.msra.mxu1 %v554_v34 }
  0x18   : > { %v316_v6 = vmul.f32 %v587_v3, %v315_v5 }
  0x1a   : > { %v317_v7 = vadd.f32 %v587_v3, %v316_v6  ;;  %429 = vmatpush.bf16.msra.mxu1 %v553_v35 }
  0x1c   : > { %v319_v8 = vsel %vm318_vm1, %v587_v3, %v317_v7 }
  0x84   : > { %v312_v9 = vpop.xlane.xlu0 %311 }
  0x85   : > { %v320_v10 = vmul.f32 %v319_v8, %v312_v9 }
  0x87   : > { %v321_v11 = vsub.f32 %v306_v0, %v320_v10 }
  0x89   : > { %v322_v12 = vmul.f32 %v321_v11, %v321_v11 }
  0x8b   : > { %v323_v13 = vsel %vm309_vm0, %v322_v12, 0.0 }
  0x8c   : > { %324 = vadd.xlane.f32.xlu0 %v323_v13 }
  0xff   : > { %v325_v17 = vpop.xlane.xlu0 %324 }
 0x100   : > { %v326_v18 = vmul.f32 %v325_v17, %v319_v8 }
 0x102   : > { %v327_v20 = vadd.f32 1e-05, %v326_v18 }
 0x104   : > { %588 = vrsqrt.f32 %v327_v20  ;;  %vm334_vm3 = vweird.f32 %v327_v20 }
 0x10a   : > { %v589_v21 = vpop.eup %588 }
 0x10b   : > { %v329_v22 = vmul.f32 %v589_v21, %v327_v20  ;;  %vm335_vm2 = vweird.f32 %v589_v21 }
 0x10c   : > { %vm336_vm4 = vmor %vm334_vm3, %vm335_vm2 }
 0x10d   : > { %v330_v23 = vmul.f32 %v589_v21, %v329_v22 }
 0x10f   : > { %v331_v24 = vmul.f32 0.5, %v330_v23 }
 0x111   : > { %v332_v25 = vsub.f32 1.5, %v331_v24 }
 0x113   : > { %v333_v26 = vmul.f32 %v589_v21, %v332_v25 }
 0x115   : > { %v337_v28 = vsel %vm336_vm4, %v589_v21, %v333_v26 }
 0x116   : > { %v338_v29 = vmul.f32 %v337_v28, %v321_v11 }
 0x118   : > { %v342_v31 = vmul.f32 %v582_v27, %v338_v29 }
 0x11a   : > { %v346_v32 = vadd.f32 %v583_v30, %v342_v31 }
 0x11c   : > { %v347_v33 = vpack.c.bf16 %v346_v32, %v346_v32 }
 0x11e   : > { %531 = vmatmul.msk.bf16.vlgmr.msra.gmra.mxu0 %vm309_vm0, %v347_v33 }
 0x19b   : > { %v380_v37 = vpop.f32.mrf.mxu0 }
 0x19c   : > { %v381_v38 = vadd.f32 %v584_v36, %v380_v37 }
 0x19e   : > { %v384_v39 = vmax.f32 %v381_v38, 0.0 }
 0x1a0   : > { %v385_v40 = vpack.c.bf16 %v384_v39, %v384_v39 }
 0x1a2   : > { %548 = vmatmul.msk.bf16.vlgmr.msra.gmra.mxu1 %vm418_vm5, %v385_v40 }
 0x1a3   : > { %v382_v41 = vpop.f32.mrf.mxu0 }
 0x21f   : > { %v431_v43 = vpop.f32.mrf.mxu1 }
 0x220   : > { %v435_v44 = vadd.f32 %v431_v43, %v306_v0 }
 0x222   : > { %v440_v45 = vadd.f32 %v585_v42, %v435_v44 }
 0x224   : > { %441 = vst.msk [vmem:[%s304_s13] sm:$0xff] %vm309_vm0, %v440_v45 }
 0x227   : > { %v433_v46 = vpop.f32.mrf.mxu1 }
 0x228 PF: > { %s17_s26 = sadd.s32 1, %s612_s26   ;;  %s737_s24 = smov %s608_s25 }
 0x229   : > { %p14_p5 = scmp.ge.s32.totalorder %s17_s26, 4   ;;  %s738_s25 = smov %s740_s27 }
 0x22b   :  { %16 = sbr.rel (!%p14_p5) target bundleno = 2 (0x2), region = 78 }

// kernel: ls_transformer_encoder_forward.6
= control target key start
LH: loop header
LB: loop body
LE: loop exit
PB: predicated region body
PF: predicated region fallthrough
CT: control target
= control target key end

     0   :  { %s635_s18 = smov 0   ;;  %s637_s19 = smov 0   ;;  %s710_s0 = inlined_call_operand.vmem [shape: f32[2,8,32], index: 0, kind: input, shape index: {}]   ;;  %s711_s1 = inlined_call_operand.vmem [shape: f32[1,32], index: 1, kind: input, shape index: {}]   ;;  %s712_s2 = inlined_call_operand.vmem [shape: f32[1,32], index: 2, kind: input, shape index: {}]   ;;  %s713_s3 = inlined_call_operand.vmem [shape: bf16[3,32,32], index: 3, kind: input, shape index: {}]   ;;  %s714_s4 = inlined_call_operand.vmem [shape: f32[3,1,32], index: 4, kind: input, shape index: {}]   ;;  %s715_s5 = inlined_call_operand.vmem [shape: bf16[2,3,8,32], index: 5, kind: output, shape index: {}]  }
   0x1   :  { %s639_s20 = smov 0  }
   0x2 LB: > { %s27_s21 = sadd.s32 1, %s598_s19  ;;  %p495_p0 = scmp.ge.s32.totalorder %s602_s20, 1  ;;  %s602_s20 = sphi %s639_s20, %s15_s20   ;;  %s598_s19 = sphi %s637_s19, %s717_s19   ;;  %s594_s18 = sphi %s635_s18, %s716_s18  }
   0x3   : > { %p29_p1 = scmp.ge.s32.totalorder %s27_s21, 2  ;;  %p205_p2 = scmp.lt.s32.totalorder %s602_s20, 3 }
   0x5   : > { %s719_s21 = smov (%p29_p1, %s27_s21), 0  ;;  %p206_p3 = pnand %p495_p0, %p205_p2 }
   0x6   : > { %p238_p4 = scmp.lt.s32.totalorder (!%p206_p3), %s594_s18, 1 }
   0x7   : > { %209 = sbr.rel (%p206_p3) target bundleno = 427 (0x1ab), region = 40 }
   0xc   : > { %s721_s18 = smov (!%p238_p4, %s594_s18), 1  ;;  %vm257_vm0 = vcmask 261120   ;;  %v604_v2 = vmov 32.0   ;;  %v540_v14 = vld [vmem:[%s713_s3 + $0x8] sm:$0xff]  ;;  %v542_v15 = vld [vmem:[%s713_s3 + $0x18] sm:$0xff]  ;;  %v539_v17 = vld [vmem:[%s713_s3] sm:$0xff] }
   0xd   : > { %s496_s22 = sshll.u32 %s721_s18, 3  ;;  %576 = vrcp.f32 %v604_v2  ;;  %v544_v16 = vld [vmem:[%s713_s3 + $0x28] sm:$0xff]  ;;  %325 = vmatpush.bf16.msra.mxu0 %v540_v14  ;;  %363 = vmatpush.bf16.msra.mxu1 %v542_v15  ;;  %v541_v18 = vld [vmem:[%s713_s3 + $0x10] sm:$0xff]  ;;  %v543_v19 = vld [vmem:[%s713_s3 + $0x20] sm:$0xff]  ;;  %vm333_vm5 = vcmask 257024  }
   0xe   : > { %s244_s25 = scalar_lea.vmem %s710_s0, %s496_s22  ;;  %401 = vmatpush.bf16.msra.mxu2 %v544_v16  ;;  %v571_v29 = vld [vmem:[%s711_s1] ss:$0 sm:$0xff]  ;;  %v574_v37 = vld [vmem:[%s714_s4 + $0x1] ss:$0 sm:$0xff]  ;;  %v575_v44 = vld [vmem:[%s714_s4 + $0x2] ss:$0 sm:$0xff] }
   0xf   : > { %v254_v0 = vld [vmem:[%s244_s25] sm:$0xff]  ;;  %s545_s25 = smul.u32 12, %s721_s18 }
  0x10   : > { %v258_v1 = vsel %vm257_vm0, %v254_v0, 0.0  ;;  %v572_v32 = vld [vmem:[%s712_s2] ss:$0 sm:$0xff] }
  0x11   : > { %259 = vadd.xlane.f32.xlu0 %v258_v1  ;;  %326 = vmatpush.bf16.msra.mxu0 %v539_v17  ;;  %v573_v36 = vld [vmem:[%s714_s4] ss:$0 sm:$0xff]  ;;  %s252_s28 = scalar_lea.vmem %s715_s5, %s545_s25 }
  0x12   : > { %364 = vmatpush.bf16.msra.mxu1 %v541_v18  ;;  %402 = vmatpush.bf16.msra.mxu2 %v543_v19 }
  0x13   : > { %v577_v3 = vpop.eup %576 }
  0x14   : > { %v262_v4 = vmul.f32 32.0, %v577_v3  ;;  %vm266_vm1 = vweird.f32 %v577_v3 }
  0x16   : > { %v263_v5 = vsub.f32 1.0, %v262_v4 }
  0x18   : > { %v264_v6 = vmul.f32 %v577_v3, %v263_v5 }
  0x1a   : > { %v265_v7 = vadd.f32 %v577_v3, %v264_v6 }
  0x1c   : > { %v267_v8 = vsel %vm266_vm1, %v577_v3, %v265_v7 }
  0x84   : > { %v260_v9 = vpop.xlane.xlu0 %259 }
  0x85   : > { %v268_v10 = vmul.f32 %v267_v8, %v260_v9 }
  0x87   : > { %v269_v11 = vsub.f32 %v254_v0, %v268_v10 }
  0x89   : > { %v270_v12 = vmul.f32 %v269_v11, %v269_v11 }
  0x8b   : > { %v271_v13 = vsel %vm257_vm0, %v270_v12, 0.0 }
  0x8c   : > { %272 = vadd.xlane.f32.xlu0 %v271_v13 }
  0xff   : > { %v273_v20 = vpop.xlane.xlu0 %272 }
 0x100   : > { %v274_v21 = vmul.f32 %v273_v20, %v267_v8 }
 0x102   : > { %v275_v22 = vadd.f32 1e-05, %v274_v21 }
 0x104   : > { %578 = vrsqrt.f32 %v275_v22  ;;  %vm282_vm3 = vweird.f32 %v275_v22 }
 0x10a   : > { %v579_v23 = vpop.eup %578 }
 0x10b   : > { %v277_v24 = vmul.f32 %v579_v23, %v275_v22  ;;  %vm283_vm2 = vweird.f32 %v579_v23 }
 0x10c   : > { %vm284_vm4 = vmor %vm282_vm3, %vm283_vm2 }
 0x10d   : > { %v278_v25 = vmul.f32 %v579_v23, %v277_v24 }
 0x10f   : > { %v279_v26 = vmul.f32 0.5, %v278_v25 }
 0x111   : > { %v280_v27 = vsub.f32 1.5, %v279_v26 }
 0x113   : > { %v281_v28 = vmul.f32 %v579_v23, %v280_v27 }
 0x115   : > { %v285_v30 = vsel %vm284_vm4, %v579_v23, %v281_v28 }
 0x116   : > { %v286_v31 = vmul.f32 %v285_v30, %v269_v11 }
 0x118   : > { %v290_v33 = vmul.f32 %v571_v29, %v286_v31 }
 0x11a   : > { %v294_v34 = vadd.f32 %v572_v32, %v290_v33 }
 0x11c   : > { %v295_v35 = vpack.c.bf16 %v294_v34, %v294_v34 }
 0x11e   : > { %506 = vmatmul.msk.bf16.vlgmr.msra.gmra.mxu0 %vm257_vm0, %v295_v35  ;;  %520 = vmatmul.msk.bf16.vlgmr.msra.gmra.mxu1 %vm257_vm0, %v295_v35 }
 0x11f   : > { %535 = vmatmul.msk.bf16.vlgmr.msra.gmra.mxu2 %vm257_vm0, %v295_v35 }
 0x19b   : > { %v328_v38 = vpop.f32.mrf.mxu0  ;;  %v366_v39 = vpop.f32.mrf.mxu1 }
 0x19c   : > { %v329_v40 = vadd.f32 %v573_v36, %v328_v38  ;;  %v367_v41 = vadd.f32 %v574_v37, %v366_v39 }
 0x19e   : > { %v332_v42 = vpack.c.bf16 %v329_v40, %v329_v40  ;;  %v370_v43 = vpack.c.bf16 %v367_v41, %v367_v41 }
 0x1a0   : > { %334 = vst.msk [vmem:[%s252_s28] sm:$0xf] %vm333_vm5, %v332_v42 }
 0x1a1   : > { %521 = vst.msk [vmem:[%s252_s28 + $0x4] sm:$0xf] %vm333_vm5, %v370_v43 }
 0x1a2   : > { %v404_v45 = vpop.f32.mrf.mxu2 }
 0x1a3   : > { %v405_v46 = vadd.f32 %v575_v44, %v404_v45  ;;  %v330_v47 = vpop.f32.mrf.mxu0  ;;  %v368_v48 = vpop.f32.mrf.mxu1 }
 0x1a5   : > { %v408_v49 = vpack.c.bf16 %v405_v46, %v405_v46 }
 0x1a7   : > { %536 = vst.msk [vmem:[%s252_s28 + $0x8] sm:$0xf] %vm333_vm5, %v408_v49 }
 0x1aa   : > { %v406_v50 = vpop.f32.mrf.mxu2 }
 0x1ab PF: > { %s15_s20 = sadd.s32 1, %s602_s20   ;;  %s716_s18 = smov %s598_s19 }
 0x1ac   : > { %p12_p5 = scmp.ge.s32.totalorder %s15_s20, 4   ;;  %s717_s19 = smov %s719_s21 }
 0x1ae   :  { %14 = sbr.rel (!%p12_p5) target bundleno = 2 (0x2), region = 76 }

// kernel: ls_transformer_encoder_forward.7
= control target key start
LH: loop header
LB: loop body
LE: loop exit
PB: predicated region body
PF: predicated region fallthrough
CT: control target
= control target key end

     0   :  { %s1208_s24 = smov 0   ;;  %s1210_s25 = smov 0   ;;  %s1386_s0 = inlined_call_operand.vmem [shape: f32[2,8,32], index: 0, kind: input, shape index: {}]   ;;  %s1387_s1 = inlined_call_operand.vmem [shape: bf16[2,4,8,8], index: 1, kind: input, shape index: {}]   ;;  %s1388_s2 = inlined_call_operand.vmem [shape: bf16[2,4,8,8], index: 2, kind: input, shape index: {}]   ;;  %s1389_s3 = inlined_call_operand.vmem [shape: bf16[2,4,8,8], index: 3, kind: input, shape index: {}]   ;;  %s1390_s4 = inlined_call_operand.vmem [shape: f32[2,1,8], index: 4, kind: input, shape index: {}]   ;;  %s1391_s5 = inlined_call_operand.vmem [shape: bf16[4,8,32], index: 5, kind: input, shape index: {}]   ;;  %s1392_s6 = inlined_call_operand.vmem [shape: f32[1,32], index: 6, kind: input, shape index: {}]   ;;  %s1393_s7 = inlined_call_operand.vmem [shape: f32[2,8,32], index: 7, kind: output, shape index: {}]  }
   0x1   :  { %s1212_s26 = smov 0  }
   0x2 LB: > { %s36_s27 = sadd.s32 1, %s1159_s25  ;;  %p1056_p0 = scmp.ge.s32.totalorder %s1163_s26, 1  ;;  %s1163_s26 = sphi %s1212_s26, %s17_s26   ;;  %s1159_s25 = sphi %s1210_s25, %s1395_s25   ;;  %s1155_s24 = sphi %s1208_s24, %s1394_s24  }
   0x3   : > { %p38_p1 = scmp.ge.s32.totalorder %s36_s27, 2  ;;  %p320_p2 = scmp.lt.s32.totalorder %s1163_s26, 3 }
   0x5   : > { %s1397_s27 = smov (%p38_p1, %s36_s27), 0  ;;  %p321_p3 = pnand %p1056_p0, %p320_p2 }
   0x6   : > { %p386_p4 = scmp.lt.s32.totalorder (!%p321_p3), %s1155_s24, 1 }
   0x7   : > { %324 = sbr.rel (%p321_p3) target bundleno = 793 (0x319), region = 48 }
   0xc   : > { %s1399_s24 = smov (!%p386_p4, %s1155_s24), 1  ;;  %vm444_vm0 = vcmask 64512   ;;  %vm435_vm1 = vcmask 7168   ;;  %v1165_v12 = vmov -inf   ;;  %v1166_v30 = vmov 0  }
   0xd   : > { %s1229_s28 = sshll.u32 %s1399_s24, 4  ;;  %s422_s8 = scalar_lea.vmem %s1390_s4, %s1399_s24  ;;  %436 = vst.msk [vmem:[#allocation2] sm:$0xff] %vm435_vm1, %v1165_v12  ;;  %1113 = vset.pattern.permute.xlu0 %v1166_v30  ;;  %1112 = vset.pattern.permute.xlu2 %v1166_v30  ;;  %v1167_v31 = vmov 0.0   ;;  %vm682_vm2 = vcmask 1043456   ;;  %vm907_vm3 = vcmask 261120  }
   0xe   : > { %s408_s11 = scalar_lea.vmem %s1388_s2, %s1229_s28  ;;  %s400_s14 = scalar_lea.vmem %s1387_s1, %s1229_s28  ;;  %437 = vst.msk [vmem:[#allocation2 + $0x8] sm:$0xff] %vm435_vm1, %v1165_v12  ;;  %v1115_v13 = vld [vmem:[%s422_s8] ss:$0 sm:$0xff]  ;;  %1114 = vset.pattern.permute.xlu1 %v1166_v30 }
   0xf   : > { %v453_v0 = vld [vmem:[%s408_s11] sm:$0xf]  ;;  %v455_v1 = vld [vmem:[%s408_s11 + $0x8] sm:$0xf]  ;;  %v454_v4 = vld [vmem:[%s408_s11 + $0x4] sm:$0xf]  ;;  %s416_s17 = scalar_lea.vmem %s1389_s3, %s1229_s28 }
  0x10   : > { %v470_v2 = vsel %vm444_vm0, %v453_v0, 0  ;;  %v508_v3 = vsel %vm444_vm0, %v455_v1, 0  ;;  %v489_v5 = vsel %vm444_vm0, %v454_v4, 0  ;;  %v456_v6 = vld [vmem:[%s408_s11 + $0xc] sm:$0xf]  ;;  %438 = vst.msk [vmem:[#allocation2 + $0x10] sm:$0xff] %vm435_vm1, %v1165_v12 }
  0x11   : > { %479 = vmatpush.bf16.xpose.msra.mxu0 %v470_v2  ;;  %517 = vmatpush.bf16.xpose.msra.mxu2 %v508_v3  ;;  %v527_v7 = vsel %vm444_vm0, %v456_v6, 0  ;;  %v449_v8 = vld [vmem:[%s400_s14] sm:$0xf]  ;;  %v451_v9 = vld [vmem:[%s400_s14 + $0x8] sm:$0xf]  ;;  %439 = vst.msk [vmem:[#allocation2 + $0x18] sm:$0xff] %vm435_vm1, %v1165_v12 }
  0x12   : > { %498 = vmatpush.bf16.xpose.msra.mxu1 %v489_v5  ;;  %536 = vmatpush.bf16.xpose.msra.mxu3 %v527_v7  ;;  %v450_v10 = vld [vmem:[%s400_s14 + $0x4] sm:$0xf]  ;;  %v452_v11 = vld [vmem:[%s400_s14 + $0xc] sm:$0xf]  ;;  %442 = vst.msk [vmem:[#allocation3 + $0x10] sm:$0xff] %vm435_vm1, %v1167_v31  ;;  %s1057_s30 = sshll.u32 %s1399_s24, 3 }
  0x13   : > { %440 = vst.msk [vmem:[#allocation3] sm:$0xff] %vm435_vm1, %v1167_v31  ;;  %v459_v48 = vld [vmem:[%s416_s17 + $0x8] sm:$0xf]  ;;  %v460_v50 = vld [vmem:[%s416_s17 + $0xc] sm:$0xf]  ;;  %s392_s10 = scalar_lea.vmem %s1386_s0, %s1057_s30  ;;  %s429_s24 = scalar_lea.vmem %s1393_s7, %s1057_s30 }
  0x14   : > { %441 = vst.msk [vmem:[#allocation3 + $0x8] sm:$0xff] %vm435_vm1, %v1167_v31  ;;  %v1276_v32 = vld [vmem:[#allocation2] sm:$0xff]  ;;  %v722_v49 = vsel %vm682_vm2, %v459_v48, 0  ;;  %v741_v51 = vsel %vm682_vm2, %v460_v50, 0 }
  0x15   : > { %443 = vst.msk [vmem:[#allocation3 + $0x18] sm:$0xff] %vm435_vm1, %v1167_v31  ;;  %v1288_v38 = vld [vmem:[#allocation2 + $0x8] sm:$0xff]  ;;  %v457_v52 = vld [vmem:[%s416_s17] sm:$0xf]  ;;  %v458_v59 = vld [vmem:[%s416_s17 + $0x4] sm:$0xf] }
  0x16   : > { %445 = vst.msk [vmem:[#allocation4] sm:$0xff] %vm444_vm0, %v1167_v31  ;;  %v684_v54 = vsel %vm682_vm2, %v457_v52, 0  ;;  %v703_v61 = vsel %vm682_vm2, %v458_v59, 0 }
  0x17   : > { %446 = vst.msk [vmem:[#allocation4 + $0x8] sm:$0xff] %vm444_vm0, %v1167_v31  ;;  %v1286_v36 = vld [vmem:[#allocation2 + $0x10] sm:$0xff] }
  0x18   : > { %1065 = vmatmul.msk.bf16.vlgmr.msra.gmra.mxu0 %vm444_vm0, %v449_v8  ;;  %1067 = vmatmul.msk.bf16.vlgmr.msra.gmra.mxu2 %vm444_vm0, %v451_v9  ;;  %447 = vst.msk [vmem:[#allocation4 + $0x10] sm:$0xff] %vm444_vm0, %v1167_v31  ;;  %v1306_v44 = vld [vmem:[#allocation2 + $0x18] sm:$0xff] }
  0x19   : > { %1066 = vmatmul.msk.bf16.vlgmr.msra.gmra.mxu1 %vm444_vm0, %v450_v10  ;;  %1068 = vmatmul.msk.bf16.vlgmr.msra.gmra.mxu3 %vm444_vm0, %v452_v11  ;;  %448 = vst.msk [vmem:[#allocation4 + $0x18] sm:$0xff] %vm444_vm0, %v1167_v31 }
  0x1a   : > { %731 = vmatpush.bf16.msrb.mxu2 %v722_v49  ;;  %750 = vmatpush.bf16.msrb.mxu3 %v741_v51 }
  0x1b   : > { %693 = vmatpush.bf16.msrb.mxu0 %v684_v54  ;;  %712 = vmatpush.bf16.msrb.mxu1 %v703_v61  ;;  %v619_v54 = vld [vmem:[#allocation3 + $0x8] sm:$0xff] }
  0x95   : > { %v481_v14 = vpop.f32.mrf.mxu0 }
  0x96   : > { %v1255_v15 = vadd.f32 %v1115_v13, %v481_v14  ;;  %v500_v16 = vpop.f32.mrf.mxu1 }
  0x97   : > { %v1259_v18 = vadd.f32 %v1115_v13, %v500_v16 }
  0x98   : > { %v546_v17 = vsel %vm444_vm0, %v1255_v15, -inf }
  0x99   : > { %547 = vmax.xlane.f32.xlu1 %v546_v17  ;;  %v549_v24 = vsel %vm444_vm0, %v1259_v18, -inf }
  0x9b   : > { %v519_v19 = vpop.f32.mrf.mxu2 }
  0x9c   : > { %v520_v20 = vadd.f32 %v1115_v13, %v519_v19  ;;  %v538_v22 = vpop.f32.mrf.mxu3 }
  0x9d   : > { %v483_v21 = vpop.f32.mrf.mxu0  ;;  %v1264_v26 = vadd.f32 %v1115_v13, %v538_v22 }
  0x9e   : > { %v552_v23 = vsel %vm444_vm0, %v520_v20, -inf  ;;  %v502_v25 = vpop.f32.mrf.mxu1 }
  0x9f   : > { %553 = vmax.xlane.f32.xlu0 %v552_v23  ;;  %v555_v28 = vsel %vm444_vm0, %v1264_v26, -inf }
  0xa1   : > { %550 = vmax.xlane.f32.xlu1 %v549_v24 }
  0xa3   : > { %v521_v27 = vpop.f32.mrf.mxu2 }
  0xa4   : > { %v540_v29 = vpop.f32.mrf.mxu3 }
  0xa7   : > { %556 = vmax.xlane.f32.xlu0 %v555_v28 }
 0x10c   : > { %v548_v33 = vpop.xlane.xlu1 %547 }
 0x10d   : > { %v1279_v34 = vmax.f32 %v1276_v32, %v548_v33 }
 0x10f   : > { %v562_v35 = vsub.f32 %v1276_v32, %v1279_v34  ;;  %764 = vst.msk [vmem:[#allocation2] sm:$0xff] %vm435_vm1, %v1279_v34  ;;  %576 = vperm.xlu0 %1113, %v1279_v34   ;;  %v621_v32 = vld [vmem:[#allocation3 + $0x18] sm:$0xff] }
 0x111   : > { %v566_v31 = vmul.f32 1.442695, %v562_v35 }
 0x112   : > { %v554_v37 = vpop.xlane.xlu0 %553 }
 0x113   : > { %v1291_v39 = vmax.f32 %v1286_v36, %v554_v37 }
 0x114   : > { %v551_v40 = vpop.xlane.xlu1 %550 }
 0x115   : > { %v564_v41 = vsub.f32 %v1286_v36, %v1291_v39  ;;  %766 = vst.msk [vmem:[#allocation2 + $0x10] sm:$0xff] %vm435_vm1, %v1291_v39  ;;  %v1298_v42 = vmax.f32 %v1288_v38, %v551_v40  ;;  %586 = vperm.xlu2 %1112, %v1291_v39  }
 0x117   : > { %v563_v43 = vsub.f32 %v1288_v38, %v1298_v42  ;;  %765 = vst.msk [vmem:[#allocation2 + $0x8] sm:$0xff] %vm435_vm1, %v1298_v42  ;;  %581 = vperm.xlu1 %1114, %v1298_v42   ;;  %v570_v30 = vmul.f32 1.442695, %v564_v41  ;;  %v618_v42 = vld [vmem:[#allocation3] sm:$0xff] }
 0x119   : > { %v568_v37 = vmul.f32 1.442695, %v563_v43 }
 0x11a   : > { %v557_v45 = vpop.xlane.xlu0 %556 }
 0x11b   : > { %v561_v46 = vmax.f32 %v1306_v44, %v557_v45  ;;  %v620_v45 = vld [vmem:[#allocation3 + $0x10] sm:$0xff] }
 0x11d   : > { %v565_v47 = vsub.f32 %v1306_v44, %v561_v46  ;;  %767 = vst.msk [vmem:[#allocation2 + $0x18] sm:$0xff] %vm435_vm1, %v561_v46  ;;  %591 = vperm.xlu2 %1112, %v561_v46  }
 0x11f   : > { %v572_v27 = vmul.f32 1.442695, %v565_v47 }
 0x16f   : > { %v587_v53 = vpop.permute.xlu2 %586 }
 0x170   : > { %v596_v55 = vsub.f32 %v520_v20, %v587_v53 }
 0x172   : > { %v600_v56 = vpack.c.bf16 %v596_v55, %v596_v55 }
 0x174   : > { %v604_v57 = vunpack.c.l.bf16 %v600_v56 }
 0x176   : > { %v610_v58 = vmul.f32 1.442695, %v604_v57 }
 0x177   : > { %v592_v60 = vpop.permute.xlu2 %591 }
 0x178   : > { %1117 = vpow2.f32 %v610_v58  ;;  %v597_v62 = vsub.f32 %v1264_v26, %v592_v60 }
 0x17a   : > { %v601_v63 = vpack.c.bf16 %v597_v62, %v597_v62  ;;  %v654_v62 = vld [vmem:[#allocation4 + $0x18] sm:$0xff] }
 0x17c   : > { %v605_v0 = vunpack.c.l.bf16 %v601_v63 }
 0x17e   : > { %v1118_v1 = vpop.eup %1117  ;;  %v612_v2 = vmul.f32 1.442695, %v605_v0  ;;  %v653_v0 = vld [vmem:[#allocation4 + $0x10] sm:$0xff] }
 0x17f   : > { %v616_v3 = vpack.c.bf16 %v1118_v1, %v1118_v1 }
 0x180   : > { %1119 = vpow2.f32 %v612_v2 }
 0x181   : > { %1071 = vmatmul.msk.bf16.vlgmr.msrb.gmra.mxu2 %vm444_vm0, %v616_v3  ;;  %v577_v4 = vpop.permute.xlu0 %576  ;;  %v628_v5 = vunpack.c.l.bf16 %v616_v3 }
 0x182   : > { %v594_v6 = vsub.f32 %v1255_v15, %v577_v4 }
 0x183   : > { %v636_v7 = vsel %vm444_vm0, %v628_v5, 0.0 }
 0x184   : > { %v598_v8 = vpack.c.bf16 %v594_v6, %v594_v6  ;;  %637 = vadd.xlane.f32.xlu2 %v636_v7 }
 0x186   : > { %v1120_v9 = vpop.eup %1119  ;;  %v602_v10 = vunpack.c.l.bf16 %v598_v8 }
 0x187   : > { %v617_v11 = vpack.c.bf16 %v1120_v9, %v1120_v9 }
 0x188   : > { %v606_v12 = vmul.f32 1.442695, %v602_v10  ;;  %v651_v10 = vld [vmem:[#allocation4] sm:$0xff] }
 0x189   : > { %1072 = vmatmul.msk.bf16.vlgmr.msrb.gmra.mxu3 %vm444_vm0, %v617_v11  ;;  %v582_v13 = vpop.permute.xlu1 %581  ;;  %v629_v14 = vunpack.c.l.bf16 %v617_v11 }
 0x18a   : > { %1121 = vpow2.f32 %v606_v12  ;;  %v595_v16 = vsub.f32 %v1259_v18, %v582_v13 }
 0x18b   : > { %v639_v17 = vsel %vm444_vm0, %v629_v14, 0.0 }
 0x18c   : > { %v599_v19 = vpack.c.bf16 %v595_v16, %v595_v16  ;;  %640 = vadd.xlane.f32.xlu1 %v639_v17  ;;  %v652_v17 = vld [vmem:[#allocation4 + $0x8] sm:$0xff] }
 0x18e   : > { %v603_v15 = vunpack.c.l.bf16 %v599_v19 }
 0x190   : > { %v1122_v20 = vpop.eup %1121  ;;  %v608_v21 = vmul.f32 1.442695, %v603_v15 }
 0x191   : > { %v614_v22 = vpack.c.bf16 %v1122_v20, %v1122_v20 }
 0x192   : > { %1123 = vpow2.f32 %v608_v21  ;;  %v1078_v21 = vld [vmem:[%s1391_s5 + $0xc] sm:$0xf] }
 0x193   : > { %1069 = vmatmul.msk.bf16.vlgmr.msrb.gmra.mxu0 %vm444_vm0, %v614_v22  ;;  %v626_v23 = vunpack.c.l.bf16 %v614_v22  ;;  %1125 = vpow2.f32 %v572_v27  ;;  %v891_v22 = vsel %vm682_vm2, %v1078_v21, 0  ;;  %v793_v27 = vld [vmem:[%s1391_s5] sm:$0xf] }
 0x194   : > { %1127 = vpow2.f32 %v570_v30  ;;  %900 = vmatpush.bf16.msra.mxu3 %v891_v22 }
 0x195   : > { %v630_v24 = vsel %vm444_vm0, %v626_v23, 0.0  ;;  %1129 = vpow2.f32 %v566_v31  ;;  %v1076_v23 = vld [vmem:[%s1391_s5 + $0x8] sm:$0xf] }
 0x196   : > { %631 = vadd.xlane.f32.xlu0 %v630_v24  ;;  %1131 = vpow2.f32 %v568_v37  ;;  %v860_v24 = vsel %vm682_vm2, %v1076_v23, 0 }
 0x197   : > { %869 = vmatpush.bf16.msra.mxu2 %v860_v24 }
 0x198   : > { %v1124_v25 = vpop.eup %1123 }
 0x199   : > { %v615_v26 = vpack.c.bf16 %v1124_v25, %v1124_v25  ;;  %v1126_v29 = vpop.eup %1125  ;;  %v1074_v25 = vld [vmem:[%s1391_s5 + $0x4] sm:$0xf] }
 0x19a   : > { %v1128_v33 = vpop.eup %1127  ;;  %v625_v34 = vmul.f32 %v1126_v29, %v621_v32 }
 0x19b   : > { %1070 = vmatmul.msk.bf16.vlgmr.msrb.gmra.mxu1 %vm444_vm0, %v615_v26  ;;  %v627_v18 = vunpack.c.l.bf16 %v615_v26  ;;  %v1130_v40 = vpop.eup %1129  ;;  %v624_v36 = vmul.f32 %v1128_v33, %v620_v45  ;;  %v829_v26 = vsel %vm682_vm2, %v1074_v25, 0 }
 0x19c   : > { %v1132_v44 = vpop.eup %1131  ;;  %v622_v48 = vmul.f32 %v1130_v40, %v618_v42  ;;  %838 = vmatpush.bf16.msra.mxu1 %v829_v26 }
 0x19d   : > { %v633_v28 = vsel %vm444_vm0, %v627_v18, 0.0  ;;  %v623_v57 = vmul.f32 %v1132_v44, %v619_v54  ;;  %v798_v18 = vsel %vm682_vm2, %v793_v27, 0 }
 0x19e   : > { %634 = vadd.xlane.f32.xlu2 %v633_v28  ;;  %807 = vmatpush.bf16.msra.mxu0 %v798_v18 }
 0x1a5   : > { %672 = vperm.xlu1 %1114, %v1126_v29  }
 0x1b6   : > { %667 = vperm.xlu2 %1112, %v1128_v33  }
 0x1be   : > { %657 = vperm.xlu2 %1112, %v1130_v40  }
 0x1c6   : > { %662 = vperm.xlu2 %1112, %v1132_v44  }
 0x1f7   : > { %v638_v39 = vpop.xlane.xlu2 %637 }
 0x1f8   : > { %v644_v41 = vadd.f32 %v638_v39, %v624_v36 }
 0x1fa   : > { %649 = vst.msk [vmem:[#allocation3 + $0x10] sm:$0xff] %vm435_vm1, %v644_v41 }
 0x1ff   : > { %v641_v35 = vpop.xlane.xlu1 %640 }
 0x200   : > { %v645_v46 = vadd.f32 %v641_v35, %v625_v34 }
 0x201   : > { %v773_v47 = vld [vmem:[#allocation3 + $0x10] sm:$0xff] }
 0x202   : > { %650 = vst.msk [vmem:[#allocation3 + $0x18] sm:$0xff] %vm435_vm1, %v645_v46  ;;  %1133 = vrcp.f32 %v773_v47 }
 0x204   : > { %v733_v38 = vpop.f32.mrf.mxu2 }
 0x208   : > { %v1134_v43 = vpop.eup %1133 }
 0x209   : > { %849 = vperm.xlu0 %1113, %v1134_v43   ;;  %v632_v49 = vpop.xlane.xlu0 %631  ;;  %v774_v50 = vld [vmem:[#allocation3 + $0x18] sm:$0xff] }
 0x20a   : > { %v642_v51 = vadd.f32 %v632_v49, %v622_v48  ;;  %1135 = vrcp.f32 %v774_v50  ;;  %v1116_v49 = vld [vmem:[%s1392_s6] ss:$0 sm:$0xff] }
 0x20b   : > { %v779_v50 = vld [vmem:[%s392_s10] sm:$0xff] }
 0x20c   : > { %647 = vst.msk [vmem:[#allocation3] sm:$0xff] %vm435_vm1, %v642_v51  ;;  %v735_v52 = vpop.f32.mrf.mxu2  ;;  %v752_v53 = vpop.f32.mrf.mxu3 }
 0x20d   : > { %v784_v52 = vadd.f32 %v1116_v49, %v779_v50 }
 0x210   : > { %v1136_v55 = vpop.eup %1135  ;;  %v695_v56 = vpop.f32.mrf.mxu0 }
 0x211   : > { %v635_v58 = vpop.xlane.xlu2 %634  ;;  %880 = vperm.xlu2 %1112, %v1136_v55  }
 0x212   : > { %v643_v59 = vadd.f32 %v635_v58, %v623_v57 }
 0x213   : > { %v771_v60 = vld [vmem:[#allocation3] sm:$0xff] }
 0x214   : > { %648 = vst.msk [vmem:[#allocation3 + $0x8] sm:$0xff] %vm435_vm1, %v643_v59  ;;  %v754_v61 = vpop.f32.mrf.mxu3  ;;  %1137 = vrcp.f32 %v771_v60 }
 0x217   : > { %v673_v63 = vpop.permute.xlu1 %672 }
 0x218   : > { %v678_v1 = vmul.f32 %v673_v63, %v654_v62  ;;  %v697_v2 = vpop.f32.mrf.mxu0  ;;  %v714_v3 = vpop.f32.mrf.mxu1 }
 0x219   : > { %v668_v4 = vpop.permute.xlu2 %667 }
 0x21a   : > { %v1138_v5 = vpop.eup %1137  ;;  %v759_v6 = vadd.f32 %v752_v53, %v678_v1  ;;  %v677_v7 = vmul.f32 %v668_v4, %v653_v0 }
 0x21b   : > { %788 = vperm.xlu1 %1114, %v1138_v5   ;;  %v772_v8 = vld [vmem:[#allocation3 + $0x8] sm:$0xff] }
 0x21c   : > { %763 = vst.msk [vmem:[#allocation4 + $0x18] sm:$0xff] %vm444_vm0, %v759_v6  ;;  %v758_v9 = vadd.f32 %v733_v38, %v677_v7  ;;  %1139 = vrcp.f32 %v772_v8 }
 0x21e   : > { %762 = vst.msk [vmem:[#allocation4 + $0x10] sm:$0xff] %vm444_vm0, %v758_v9 }
 0x220   : > { %v716_v11 = vpop.f32.mrf.mxu1 }
 0x221   : > { %v658_v12 = vpop.permute.xlu2 %657 }
 0x222   : > { %v1140_v13 = vpop.eup %1139  ;;  %v675_v14 = vmul.f32 %v658_v12, %v651_v10 }
 0x223   : > { %818 = vperm.xlu2 %1112, %v1140_v13   ;;  %v877_v28 = vld [vmem:[#allocation4 + $0x18] sm:$0xff] }
 0x224   : > { %v756_v16 = vadd.f32 %v695_v56, %v675_v14 }
 0x225   : > { %v846_v37 = vld [vmem:[#allocation4 + $0x10] sm:$0xff] }
 0x226   : > { %760 = vst.msk [vmem:[#allocation4] sm:$0xff] %vm444_vm0, %v756_v16 }
 0x229   : > { %v663_v19 = vpop.permute.xlu2 %662 }
 0x22a   : > { %v676_v15 = vmul.f32 %v663_v19, %v652_v17 }
 0x22c   : > { %v757_v20 = vadd.f32 %v714_v3, %v676_v15 }
 0x22d   : > { %v785_v32 = vld [vmem:[#allocation4] sm:$0xff] }
 0x22e   : > { %761 = vst.msk [vmem:[#allocation4 + $0x8] sm:$0xff] %vm444_vm0, %v757_v20 }
 0x235   : > { %v815_v44 = vld [vmem:[#allocation4 + $0x8] sm:$0xff] }
 0x26b   : > { %v881_v29 = vpop.permute.xlu2 %880 }
 0x26c   : > { %v883_v30 = vmul.f32 %v881_v29, %v877_v28 }
 0x26e   : > { %v884_v31 = vpack.c.bf16 %v883_v30, %v883_v30 }
 0x270   : > { %1079 = vmatmul.msk.bf16.vlgmr.msra.gmra.mxu3 %vm444_vm0, %v884_v31 }
 0x27b   : > { %v850_v33 = vpop.permute.xlu0 %849 }
 0x27c   : > { %v852_v40 = vmul.f32 %v850_v33, %v846_v37 }
 0x27d   : > { %v819_v45 = vpop.permute.xlu2 %818 }
 0x27e   : > { %v853_v36 = vpack.c.bf16 %v852_v40, %v852_v40  ;;  %v821_v39 = vmul.f32 %v819_v45, %v815_v44 }
 0x280   : > { %v822_v41 = vpack.c.bf16 %v821_v39, %v821_v39  ;;  %1077 = vmatmul.msk.bf16.vlgmr.msra.gmra.mxu2 %vm444_vm0, %v853_v36 }
 0x282   : > { %1075 = vmatmul.msk.bf16.vlgmr.msra.gmra.mxu1 %vm444_vm0, %v822_v41 }
 0x28d   : > { %v789_v34 = vpop.permute.xlu1 %788 }
 0x28e   : > { %v791_v35 = vmul.f32 %v789_v34, %v785_v32 }
 0x290   : > { %v792_v46 = vpack.c.bf16 %v791_v35, %v791_v35 }
 0x292   : > { %1073 = vmatmul.msk.bf16.vlgmr.msra.gmra.mxu0 %vm444_vm0, %v792_v46 }
 0x2f3   : > { %v902_v47 = vpop.f32.mrf.mxu3 }
 0x2fb   : > { %v904_v38 = vpop.f32.mrf.mxu3 }
 0x2ff   : > { %v840_v42 = vpop.f32.mrf.mxu1 }
 0x303   : > { %v871_v43 = vpop.f32.mrf.mxu2 }
 0x307   : > { %v842_v48 = vpop.f32.mrf.mxu1 }
 0x30b   : > { %v873_v51 = vpop.f32.mrf.mxu2 }
 0x30f   : > { %v809_v53 = vpop.f32.mrf.mxu0 }
 0x310   : > { %v813_v54 = vadd.f32 %v809_v53, %v784_v52 }
 0x312   : > { %v844_v55 = vadd.f32 %v840_v42, %v813_v54 }
 0x314   : > { %v875_v56 = vadd.f32 %v871_v43, %v844_v55 }
 0x316   : > { %v906_v57 = vadd.f32 %v902_v47, %v875_v56 }
 0x317   : > { %v811_v58 = vpop.f32.mrf.mxu0 }
 0x318   : > { %908 = vst.msk [vmem:[%s429_s24] sm:$0xff] %vm907_vm3, %v906_v57 }
 0x319 PF: > { %s17_s26 = sadd.s32 1, %s1163_s26   ;;  %s1394_s24 = smov %s1159_s25 }
 0x31a   : > { %p14_p5 = scmp.ge.s32.totalorder %s17_s26, 4   ;;  %s1395_s25 = smov %s1397_s27 }
 0x31c   :  { %16 = sbr.rel (!%p14_p5) target bundleno = 2 (0x2), region = 104 }

// kernel: ls_transformer_encoder_forward.11
= control target key start
LH: loop header
LB: loop body
LE: loop exit
PB: predicated region body
PF: predicated region fallthrough
CT: control target
= control target key end

     0   :  { %s755_s30 = smov 0   ;;  %s757_s10 = smov 0   ;;  %s837_s0 = inlined_call_operand.vmem [shape: f32[2,8,32], index: 0, kind: input, shape index: {}]   ;;  %s838_s1 = inlined_call_operand.vmem [shape: f32[1,32], index: 1, kind: input, shape index: {}]   ;;  %s839_s2 = inlined_call_operand.vmem [shape: f32[1,32], index: 2, kind: input, shape index: {}]   ;;  %s840_s3 = inlined_call_operand.vmem [shape: bf16[32,64], index: 3, kind: input, shape index: {}]   ;;  %s841_s4 = inlined_call_operand.vmem [shape: f32[1,64], index: 4, kind: input, shape index: {}]   ;;  %s842_s5 = inlined_call_operand.vmem [shape: bf16[64,32], index: 5, kind: input, shape index: {}]   ;;  %s843_s6 = inlined_call_operand.vmem [shape: f32[1,32], index: 6, kind: input, shape index: {}]   ;;  %s844_s7 = inlined_call_operand.vmem [shape: f32[1,32], index: 7, kind: input, shape index: {}]   ;;  %s845_s8 = inlined_call_operand.vmem [shape: f32[1,32], index: 8, kind: input, shape index: {}]   ;;  %s846_s9 = inlined_call_operand.vmem [shape: f32[2,8,32], index: 9, kind: output, shape index: {}]  }
   0x1   :  { %s759_s11 = smov 0  }
   0x2 LB: > { %s31_s12 = sadd.s32 1, %s698_s10  ;;  %p606_p0 = scmp.ge.s32.totalorder %s702_s11, 1  ;;  %s702_s11 = sphi %s759_s11, %s19_s11   ;;  %s698_s10 = sphi %s757_s10, %s848_s10   ;;  %s694_s30 = sphi %s755_s30, %s847_s30  }
   0x3   : > { %p33_p1 = scmp.ge.s32.totalorder %s31_s12, 2  ;;  %p305_p2 = scmp.lt.s32.totalorder %s702_s11, 3 }
   0x5   : > { %s850_s12 = smov (%p33_p1, %s31_s12), 0  ;;  %p306_p3 = pnand %p606_p0, %p305_p2 }
   0x6   : > { %p345_p4 = scmp.lt.s32.totalorder (!%p306_p3), %s694_s30, 1 }
   0x7   : > { %309 = sbr.rel (%p306_p3) target bundleno = 817 (0x331), region = 56 }
   0xc   : > { %s852_s30 = smov (!%p345_p4, %s694_s30), 1  ;;  %vm363_vm0 = vcmask 261120   ;;  %v704_v2 = vmov 32.0   ;;  %v638_v14 = vld [vmem:[%s840_s3 + $0x8] sm:$0xff]  ;;  %v637_v15 = vld [vmem:[%s840_s3] sm:$0xff]  ;;  %v642_v16 = vld [vmem:[%s842_s5 + $0x18] sm:$0xff] }
   0xd   : > { %s607_s13 = sshll.u32 %s852_s30, 3  ;;  %674 = vrcp.f32 %v704_v2  ;;  %431 = vmatpush.bf16.msra.mxu0 %v638_v14  ;;  %480 = vmatpush.bf16.msra.mxu1 %v642_v16  ;;  %v641_v19 = vld [vmem:[%s842_s5 + $0x10] sm:$0xff]  ;;  %v668_v27 = vld [vmem:[%s838_s1] ss:$0 sm:$0xff]  ;;  %v640_v34 = vld [vmem:[%s842_s5 + $0x8] sm:$0xff]  ;;  %vm472_vm5 = vcmask 523264  }
   0xe   : > { %s351_s16 = scalar_lea.vmem %s837_s0, %s607_s13  ;;  %v669_v30 = vld [vmem:[%s839_s2] ss:$0 sm:$0xff]  ;;  %s358_s27 = scalar_lea.vmem %s846_s9, %s607_s13 }
   0xf   : > { %v360_v0 = vld [vmem:[%s351_s16] sm:$0xff] }
  0x10   : > { %v364_v1 = vsel %vm363_vm0, %v360_v0, 0.0  ;;  %v639_v35 = vld [vmem:[%s842_s5] sm:$0xff] }
  0x11   : > { %365 = vadd.xlane.f32.xlu0 %v364_v1  ;;  %432 = vmatpush.bf16.msra.mxu0 %v637_v15  ;;  %v670_v36 = vld [vmem:[%s841_s4] ss:$0 sm:$0xff] }
  0x12   : > { %481 = vmatpush.bf16.msra.mxu1 %v641_v19  ;;  %v671_v42 = vld [vmem:[%s843_s6] ss:$0 sm:$0xff] }
  0x13   : > { %v675_v3 = vpop.eup %674  ;;  %v672_v62 = vld [vmem:[%s844_s7] ss:$0 sm:$0xff] }
  0x14   : > { %v368_v4 = vmul.f32 32.0, %v675_v3  ;;  %vm372_vm1 = vweird.f32 %v675_v3 }
  0x16   : > { %v369_v5 = vsub.f32 1.0, %v368_v4  ;;  %482 = vmatpush.bf16.msra.mxu1 %v640_v34 }
  0x18   : > { %v370_v6 = vmul.f32 %v675_v3, %v369_v5 }
  0x1a   : > { %v371_v7 = vadd.f32 %v675_v3, %v370_v6  ;;  %483 = vmatpush.bf16.msra.mxu1 %v639_v35 }
  0x1c   : > { %v373_v8 = vsel %vm372_vm1, %v675_v3, %v371_v7 }
  0x84   : > { %v366_v9 = vpop.xlane.xlu0 %365 }
  0x85   : > { %v374_v10 = vmul.f32 %v373_v8, %v366_v9 }
  0x87   : > { %v375_v11 = vsub.f32 %v360_v0, %v374_v10 }
  0x89   : > { %v376_v12 = vmul.f32 %v375_v11, %v375_v11 }
  0x8b   : > { %v377_v13 = vsel %vm363_vm0, %v376_v12, 0.0 }
  0x8c   : > { %378 = vadd.xlane.f32.xlu0 %v377_v13 }
  0xff   : > { %v379_v17 = vpop.xlane.xlu0 %378 }
 0x100   : > { %v380_v18 = vmul.f32 %v379_v17, %v373_v8 }
 0x102   : > { %v381_v20 = vadd.f32 1e-05, %v380_v18 }
 0x104   : > { %676 = vrsqrt.f32 %v381_v20  ;;  %vm388_vm3 = vweird.f32 %v381_v20 }
 0x10a   : > { %v677_v21 = vpop.eup %676 }
 0x10b   : > { %v383_v22 = vmul.f32 %v677_v21, %v381_v20  ;;  %vm389_vm2 = vweird.f32 %v677_v21 }
 0x10c   : > { %vm390_vm4 = vmor %vm388_vm3, %vm389_vm2 }
 0x10d   : > { %v384_v23 = vmul.f32 %v677_v21, %v383_v22 }
 0x10f   : > { %v385_v24 = vmul.f32 0.5, %v384_v23 }
 0x111   : > { %v386_v25 = vsub.f32 1.5, %v385_v24 }
 0x113   : > { %v387_v26 = vmul.f32 %v677_v21, %v386_v25 }
 0x115   : > { %v391_v28 = vsel %vm390_vm4, %v677_v21, %v387_v26 }
 0x116   : > { %v392_v29 = vmul.f32 %v391_v28, %v375_v11 }
 0x118   : > { %v396_v31 = vmul.f32 %v668_v27, %v392_v29 }
 0x11a   : > { %v400_v32 = vadd.f32 %v669_v30, %v396_v31 }
 0x11c   : > { %v401_v33 = vpack.c.bf16 %v400_v32, %v400_v32 }
 0x11e   : > { %617 = vmatmul.msk.bf16.vlgmr.msra.gmra.mxu0 %vm363_vm0, %v401_v33 }
 0x19b   : > { %v434_v37 = vpop.f32.mrf.mxu0 }
 0x19c   : > { %v435_v38 = vadd.f32 %v670_v36, %v434_v37 }
 0x19e   : > { %v438_v39 = vmax.f32 %v435_v38, 0.0 }
 0x1a0   : > { %v439_v40 = vpack.c.bf16 %v438_v39, %v438_v39 }
 0x1a2   : > { %634 = vmatmul.msk.bf16.vlgmr.msra.gmra.mxu1 %vm472_vm5, %v439_v40 }
 0x1a3   : > { %v436_v41 = vpop.f32.mrf.mxu0 }
 0x21f   : > { %v485_v43 = vpop.f32.mrf.mxu1 }
 0x220   : > { %v489_v44 = vadd.f32 %v485_v43, %v360_v0  ;;  %v673_v0 = vld [vmem:[%s845_s8] ss:$0 sm:$0xff] }
 0x222   : > { %v494_v45 = vadd.f32 %v671_v42, %v489_v44 }
 0x224   : > { %v497_v46 = vsel %vm363_vm0, %v494_v45, 0.0 }
 0x225   : > { %498 = vadd.xlane.f32.xlu1 %v497_v46 }
 0x227   : > { %v487_v47 = vpop.f32.mrf.mxu1 }
 0x298   : > { %v499_v48 = vpop.xlane.xlu1 %498 }
 0x299   : > { %v500_v49 = vmul.f32 %v499_v48, %v373_v8 }
 0x29b   : > { %v501_v50 = vsub.f32 %v494_v45, %v500_v49 }
 0x29d   : > { %v502_v51 = vmul.f32 %v501_v50, %v501_v50 }
 0x29f   : > { %v503_v52 = vsel %vm363_vm0, %v502_v51, 0.0 }
 0x2a0   : > { %504 = vadd.xlane.f32.xlu1 %v503_v52 }
 0x313   : > { %v505_v53 = vpop.xlane.xlu1 %504 }
 0x314   : > { %v506_v54 = vmul.f32 %v505_v53, %v373_v8 }
 0x316   : > { %v507_v55 = vadd.f32 1e-05, %v506_v54 }
 0x318   : > { %678 = vrsqrt.f32 %v507_v55  ;;  %vm514_vm7 = vweird.f32 %v507_v55 }
 0x31e   : > { %v679_v56 = vpop.eup %678 }
 0x31f   : > { %v509_v57 = vmul.f32 %v679_v56, %v507_v55  ;;  %vm515_vm6 = vweird.f32 %v679_v56 }
 0x320   : > { %vm516_vm8 = vmor %vm514_vm7, %vm515_vm6 }
 0x321   : > { %v510_v58 = vmul.f32 %v679_v56, %v509_v57 }
 0x323   : > { %v511_v59 = vmul.f32 0.5, %v510_v58 }
 0x325   : > { %v512_v60 = vsub.f32 1.5, %v511_v59 }
 0x327   : > { %v513_v61 = vmul.f32 %v679_v56, %v512_v60 }
 0x329   : > { %v517_v63 = vsel %vm516_vm8, %v679_v56, %v513_v61 }
 0x32a   : > { %v518_v1 = vmul.f32 %v517_v63, %v501_v50 }
 0x32c   : > { %v522_v2 = vmul.f32 %v672_v62, %v518_v1 }
 0x32e   : > { %v526_v3 = vadd.f32 %v673_v0, %v522_v2 }
 0x330   : > { %527 = vst.msk [vmem:[%s358_s27] sm:$0xff] %vm363_vm0, %v526_v3 }
 0x331 PF: > { %s19_s11 = sadd.s32 1, %s702_s11   ;;  %s847_s30 = smov %s698_s10 }
 0x332   : > { %p16_p5 = scmp.ge.s32.totalorder %s19_s11, 4   ;;  %s848_s10 = smov %s850_s12 }
 0x334   :  { %18 = sbr.rel (!%p16_p5) target bundleno = 2 (0x2), region = 86 }

</bundles_post_ra>
